<compile_context>
chip_gen: v7x
topology: tpu7x:2x2x1
jax: 0.10.0
libtpu: 0.0.40
codegen_flags: <defaults>
</compile_context>

<pallas_src>
import math

import jax
import jax.numpy as jnp
from jax.experimental import pallas as pl
from jax.experimental.pallas import tpu as pltpu

N_INPUTS = 32             # n_inputs of the MLP (feature dimension of X)
H1, H2, H3, OUT = 16, 64, 128, 30
LANE = 128                # pad narrow hidden/output dims to a full 128-lane vreg
NEG_BIAS = -1e30          # bias of padded logit columns -> exp() underflows to 0


def mlp_kernel(x_ref,
               w1_ref, b1_ref,
               w2_ref, b2_ref,
               w3_ref, b3_ref,
               w4_ref, b4_ref,
               o_ref):
    # x and weights are bf16; MXU accumulates in f32; epilogue stays f32.
    x = x_ref[...]

    h = jnp.dot(x, w1_ref[...], preferred_element_type=jnp.float32) + b1_ref[...]
    h = jnp.maximum(h, 0.0)
    h = jnp.dot(h.astype(jnp.bfloat16), w2_ref[...],
                preferred_element_type=jnp.float32) + b2_ref[...]
    h = jnp.maximum(h, 0.0)
    h = jnp.dot(h.astype(jnp.bfloat16), w3_ref[...],
                preferred_element_type=jnp.float32) + b3_ref[...]
    h = jnp.maximum(h, 0.0)
    logits = jnp.dot(h.astype(jnp.bfloat16), w4_ref[...],
                     preferred_element_type=jnp.float32) + b4_ref[...]

    # Softmax over the lane-padded feature axis (PyTorch dim=1).  Padded
    # columns have logits ~ -1e30 so exp() is exactly 0 and they don't
    # contribute to max / sum.
    m = jnp.max(logits, axis=-1, keepdims=True)
    e = jnp.exp(logits - m)
    denom = jnp.sum(e, axis=-1, keepdims=True)
    o_ref[...] = (e * pl.reciprocal(denom, approx=True)).astype(o_ref.dtype)


def _pad2(a, rows, cols, fill=0.0):
    r, c = a.shape
    return jnp.pad(a, ((0, rows - r), (0, cols - c)), constant_values=fill)


def mlp_forward(x, params, *, tile_b=256):
    B, n_in = x.shape
    (w1, b1), (w2, b2), (w3, b3), (w4, b4) = params

    # Batch tile: large enough to amortize the ~0.35 us per-step pipeline
    # overhead; for tiny batches collapse to a single (8-row aligned) block.
    tb = min(tile_b, max(8, ((B + 7) // 8) * 8))
    Bp = ((B + tb - 1) // tb) * tb
    n_steps = Bp // tb

    # bf16 activations / weights at the boundary; biases stay f32.
    xp = jnp.zeros((Bp, n_in), jnp.bfloat16).at[:B].set(x.astype(jnp.bfloat16))

    w1p = _pad2(w1, n_in, LANE).astype(jnp.bfloat16)
    b1p = _pad2(b1, 1, LANE)
    w2p = _pad2(w2, LANE, LANE).astype(jnp.bfloat16)
    b2p = _pad2(b2, 1, LANE)
    w3p = _pad2(w3, LANE, LANE).astype(jnp.bfloat16)
    b3p = _pad2(b3, 1, LANE)
    w4p = _pad2(w4, LANE, LANE).astype(jnp.bfloat16)
    b4p = _pad2(b4, 1, LANE, fill=NEG_BIAS)   # kill padded softmax columns

    def const_spec(shape):
        # same full block every grid step -> weights stay resident in VMEM
        return pl.BlockSpec(shape, lambda i: (0, 0))

    out = pl.pallas_call(
        mlp_kernel,
        out_shape=jax.ShapeDtypeStruct((Bp, LANE), jnp.float32),
        grid_spec=pltpu.PrefetchScalarGridSpec(
            num_scalar_prefetch=0,
            grid=(n_steps,),
            in_specs=[
                pl.BlockSpec((tb, n_in), lambda i: (i, 0)),
                const_spec(w1p.shape), const_spec(b1p.shape),
                const_spec(w2p.shape), const_spec(b2p.shape),
                const_spec(w3p.shape), const_spec(b3p.shape),
                const_spec(w4p.shape), const_spec(b4p.shape),
            ],
            out_specs=pl.BlockSpec((tb, LANE), lambda i: (i, 0)),
        ),
        compiler_params=pltpu.CompilerParams(
            dimension_semantics=("parallel",)),
    )(xp, w1p, b1p, w2p, b2p, w3p, b3p, w4p, b4p)

    return out[:B, :OUT]


# ----------------------------- init (PyTorch-faithful) -----------------------
def _kaiming_uniform(key, fan_in, fan_out):
    # torch.nn.init.kaiming_uniform_(w, nonlinearity='relu'): bound = sqrt(6/fan_in)
    bound = math.sqrt(6.0 / fan_in)
    # stored as (in, out): transpose of PyTorch's (out, in); fan_in unchanged.
    return jax.random.uniform(key, (fan_in, fan_out), jnp.float32, -bound, bound)


def _xavier_uniform(key, fan_in, fan_out):
    bound = math.sqrt(6.0 / (fan_in + fan_out))
    return jax.random.uniform(key, (fan_in, fan_out), jnp.float32, -bound, bound)


def _linear_bias(key, fan_in, fan_out):
    # torch.nn.Linear default bias init: U(-1/sqrt(fan_in), 1/sqrt(fan_in))
    bound = 1.0 / math.sqrt(fan_in)
    return jax.random.uniform(key, (1, fan_out), jnp.float32, -bound, bound)


def init_params(key, n_inputs):
    keys = jax.random.split(key, 8)
    w1 = _kaiming_uniform(keys[0], n_inputs, H1)
    b1 = _linear_bias(keys[1], n_inputs, H1)
    w2 = _kaiming_uniform(keys[2], H1, H2)
    b2 = _linear_bias(keys[3], H1, H2)
    w3 = _kaiming_uniform(keys[4], H2, H3)
    b3 = _linear_bias(keys[5], H2, H3)
    w4 = _xavier_uniform(keys[6], H3, OUT)
    b4 = _linear_bias(keys[7], H3, OUT)
    return ((w1, b1), (w2, b2), (w3, b3), (w4, b4))


# ----------------------------- references ------------------------------------
def _reference_f32(x, params):
    (w1, b1), (w2, b2), (w3, b3), (w4, b4) = params
    h = jnp.maximum(x @ w1 + b1, 0.0)
    h = jnp.maximum(h @ w2 + b2, 0.0)
    h = jnp.maximum(h @ w3 + b3, 0.0)
    logits = h @ w4 + b4
    return jax.nn.softmax(logits, axis=1)


def _reference_bf16(x, params):
    # Mirrors the kernel's dtype plan (bf16 matmul inputs, f32 accumulation).
    def dot(a, w):
        return jnp.dot(a.astype(jnp.bfloat16), w.astype(jnp.bfloat16),
                       preferred_element_type=jnp.float32)
    (w1, b1), (w2, b2), (w3, b3), (w4, b4) = params
    h = jnp.maximum(dot(x, w1) + b1, 0.0)
    h = jnp.maximum(dot(h, w2) + b2, 0.0)
    h = jnp.maximum(dot(h, w3) + b3, 0.0)
    logits = dot(h, w4) + b4
    return jax.nn.softmax(logits, axis=1)


if __name__ == "__main__":
    key = jax.random.PRNGKey(0)
    k_param, k_x = jax.random.split(key)

    B = 512  # 2 grid steps at tile_b=256 (lets v7x use both TensorCores)
    params = init_params(k_param, N_INPUTS)
    x = jax.random.normal(k_x, (B, N_INPUTS), jnp.float32)

    out = mlp_forward(x, params, tile_b=256)
    out = jax.block_until_ready(out)

    assert out.shape == (B, OUT)

    ref16 = _reference_bf16(x, params)   # same dtype plan -> tight check
    ref32 = _reference_f32(x, params)    # PyTorch-f32 semantics -> loose check
    assert jnp.allclose(out, ref16, atol=3e-3), float(jnp.max(jnp.abs(out - ref16)))
    assert jnp.allclose(out, ref32, atol=3e-2), float(jnp.max(jnp.abs(out - ref32)))
    assert jnp.allclose(jnp.sum(out, axis=1), 1.0, atol=3e-3)

    print("KERNEL_OK")
</pallas_src>

<mosaic_0001>
module attributes {stable_mosaic.version = 11 : i64} {
  func.func @mlp_kernel(%arg0: i32, %arg1: memref<256x32xbf16, #tpu.memory_space<vmem>>, %arg2: memref<32x128xbf16, #tpu.memory_space<vmem>>, %arg3: memref<1x128xf32, #tpu.memory_space<vmem>>, %arg4: memref<128x128xbf16, #tpu.memory_space<vmem>>, %arg5: memref<1x128xf32, #tpu.memory_space<vmem>>, %arg6: memref<128x128xbf16, #tpu.memory_space<vmem>>, %arg7: memref<1x128xf32, #tpu.memory_space<vmem>>, %arg8: memref<128x128xbf16, #tpu.memory_space<vmem>>, %arg9: memref<1x128xf32, #tpu.memory_space<vmem>>, %arg10: memref<256x128xf32, #tpu.memory_space<vmem>>) attributes {dimension_semantics = [#tpu.dimension_semantics<parallel>], iteration_bounds = array<i64: 2>, scalar_prefetch = 0 : i64, scratch_operands = 0 : i64, tpu.core_type = #tpu.core_type<tc>, window_params = [{transform_indices = @transform_0, window_bounds = array<i64: 256, 32>}, {pipeline_mode = #tpu.pipeline_mode<synchronous>, transform_indices = @transform_1, window_bounds = array<i64: 32, 128>}, {pipeline_mode = #tpu.pipeline_mode<synchronous>, transform_indices = @transform_2, window_bounds = array<i64: 1, 128>}, {pipeline_mode = #tpu.pipeline_mode<synchronous>, transform_indices = @transform_3, window_bounds = array<i64: 128, 128>}, {pipeline_mode = #tpu.pipeline_mode<synchronous>, transform_indices = @transform_4, window_bounds = array<i64: 1, 128>}, {pipeline_mode = #tpu.pipeline_mode<synchronous>, transform_indices = @transform_5, window_bounds = array<i64: 128, 128>}, {pipeline_mode = #tpu.pipeline_mode<synchronous>, transform_indices = @transform_6, window_bounds = array<i64: 1, 128>}, {pipeline_mode = #tpu.pipeline_mode<synchronous>, transform_indices = @transform_7, window_bounds = array<i64: 128, 128>}, {pipeline_mode = #tpu.pipeline_mode<synchronous>, transform_indices = @transform_8, window_bounds = array<i64: 1, 128>}, {transform_indices = @transform_9, window_bounds = array<i64: 256, 128>}]} {
    %c0 = arith.constant 0 : index
    %c0_0 = arith.constant 0 : index
    %0 = vector.load %arg1[%c0, %c0_0] : memref<256x32xbf16, #tpu.memory_space<vmem>>, vector<256x32xbf16>
    %c0_1 = arith.constant 0 : index
    %c0_2 = arith.constant 0 : index
    %1 = vector.load %arg2[%c0_1, %c0_2] : memref<32x128xbf16, #tpu.memory_space<vmem>>, vector<32x128xbf16>
    %cst = arith.constant dense<0.000000e+00> : vector<256x128xf32>
    %2 = tpu.matmul %0, %1, %cst {dimension_numbers = #tpu.dot_dimension_numbers<[1], [0], [0], [1], [0, 0, 1, 1], [], []>} : vector<256x32xbf16>, vector<32x128xbf16>, vector<256x128xf32> -> vector<256x128xf32>
    %c0_3 = arith.constant 0 : index
    %c0_4 = arith.constant 0 : index
    %3 = vector.load %arg3[%c0_3, %c0_4] : memref<1x128xf32, #tpu.memory_space<vmem>>, vector<1x128xf32>
    %4 = vector.broadcast %3 : vector<1x128xf32> to vector<256x128xf32>
    %5 = arith.addf %2, %4 : vector<256x128xf32>
    %cst_5 = arith.constant 0.000000e+00 : f32
    %6 = vector.broadcast %cst_5 : f32 to vector<256x128xf32>
    %7 = arith.maximumf %5, %6 : vector<256x128xf32>
    %8 = arith.truncf %7 : vector<256x128xf32> to vector<256x128xbf16>
    %c0_6 = arith.constant 0 : index
    %c0_7 = arith.constant 0 : index
    %9 = vector.load %arg4[%c0_6, %c0_7] : memref<128x128xbf16, #tpu.memory_space<vmem>>, vector<128x128xbf16>
    %cst_8 = arith.constant dense<0.000000e+00> : vector<256x128xf32>
    %10 = tpu.matmul %8, %9, %cst_8 {dimension_numbers = #tpu.dot_dimension_numbers<[1], [0], [0], [1], [0, 0, 1, 1], [], []>} : vector<256x128xbf16>, vector<128x128xbf16>, vector<256x128xf32> -> vector<256x128xf32>
    %c0_9 = arith.constant 0 : index
    %c0_10 = arith.constant 0 : index
    %11 = vector.load %arg5[%c0_9, %c0_10] : memref<1x128xf32, #tpu.memory_space<vmem>>, vector<1x128xf32>
    %12 = vector.broadcast %11 : vector<1x128xf32> to vector<256x128xf32>
    %13 = arith.addf %10, %12 : vector<256x128xf32>
    %cst_11 = arith.constant 0.000000e+00 : f32
    %14 = vector.broadcast %cst_11 : f32 to vector<256x128xf32>
    %15 = arith.maximumf %13, %14 : vector<256x128xf32>
    %16 = arith.truncf %15 : vector<256x128xf32> to vector<256x128xbf16>
    %c0_12 = arith.constant 0 : index
    %c0_13 = arith.constant 0 : index
    %17 = vector.load %arg6[%c0_12, %c0_13] : memref<128x128xbf16, #tpu.memory_space<vmem>>, vector<128x128xbf16>
    %cst_14 = arith.constant dense<0.000000e+00> : vector<256x128xf32>
    %18 = tpu.matmul %16, %17, %cst_14 {dimension_numbers = #tpu.dot_dimension_numbers<[1], [0], [0], [1], [0, 0, 1, 1], [], []>} : vector<256x128xbf16>, vector<128x128xbf16>, vector<256x128xf32> -> vector<256x128xf32>
    %c0_15 = arith.constant 0 : index
    %c0_16 = arith.constant 0 : index
    %19 = vector.load %arg7[%c0_15, %c0_16] : memref<1x128xf32, #tpu.memory_space<vmem>>, vector<1x128xf32>
    %20 = vector.broadcast %19 : vector<1x128xf32> to vector<256x128xf32>
    %21 = arith.addf %18, %20 : vector<256x128xf32>
    %cst_17 = arith.constant 0.000000e+00 : f32
    %22 = vector.broadcast %cst_17 : f32 to vector<256x128xf32>
    %23 = arith.maximumf %21, %22 : vector<256x128xf32>
    %24 = arith.truncf %23 : vector<256x128xf32> to vector<256x128xbf16>
    %c0_18 = arith.constant 0 : index
    %c0_19 = arith.constant 0 : index
    %25 = vector.load %arg8[%c0_18, %c0_19] : memref<128x128xbf16, #tpu.memory_space<vmem>>, vector<128x128xbf16>
    %cst_20 = arith.constant dense<0.000000e+00> : vector<256x128xf32>
    %26 = tpu.matmul %24, %25, %cst_20 {dimension_numbers = #tpu.dot_dimension_numbers<[1], [0], [0], [1], [0, 0, 1, 1], [], []>} : vector<256x128xbf16>, vector<128x128xbf16>, vector<256x128xf32> -> vector<256x128xf32>
    %c0_21 = arith.constant 0 : index
    %c0_22 = arith.constant 0 : index
    %27 = vector.load %arg9[%c0_21, %c0_22] : memref<1x128xf32, #tpu.memory_space<vmem>>, vector<1x128xf32>
    %28 = vector.broadcast %27 : vector<1x128xf32> to vector<256x128xf32>
    %29 = arith.addf %26, %28 : vector<256x128xf32>
    %cst_23 = arith.constant dense<0xFF800000> : vector<256xf32>
    %30 = vector.multi_reduction <maximumf>, %29, %cst_23 [1] : vector<256x128xf32> to vector<256xf32>
    %31 = vector.shape_cast %30 : vector<256xf32> to vector<256x1xf32>
    %32 = vector.broadcast %31 : vector<256x1xf32> to vector<256x128xf32>
    %33 = arith.subf %29, %32 : vector<256x128xf32>
    %34 = math.exp %33 : vector<256x128xf32>
    %cst_24 = arith.constant dense<0.000000e+00> : vector<256xf32>
    %35 = vector.multi_reduction <add>, %34, %cst_24 [1] : vector<256x128xf32> to vector<256xf32>
    %36 = vector.shape_cast %35 : vector<256xf32> to vector<256x1xf32>
    %37 = tpu.reciprocal %36 {approx = true} : vector<256x1xf32> -> vector<256x1xf32>
    %38 = vector.broadcast %37 : vector<256x1xf32> to vector<256x128xf32>
    %39 = arith.mulf %34, %38 : vector<256x128xf32>
    %c0_25 = arith.constant 0 : index
    %c0_26 = arith.constant 0 : index
    %40 = vector.load %arg10[%c0_25, %c0_26] : memref<256x128xf32, #tpu.memory_space<vmem>>, vector<256x128xf32>
    tpu.vector_store %arg10[%c0_25, %c0_26], %39 {strides = array<i32>} : memref<256x128xf32, #tpu.memory_space<vmem>>, vector<256x128xf32>,
    return
  }
  func.func @transform_0(%arg0: i32) -> (i32, i32) {
    %c0_i32 = arith.constant 0 : i32
    %c0_i32_0 = arith.constant 0 : i32
    return %arg0, %c0_i32 : i32, i32
  }
  func.func @transform_1(%arg0: i32) -> (i32, i32) {
    %c0_i32 = arith.constant 0 : i32
    %c0_i32_0 = arith.constant 0 : i32
    %c0_i32_1 = arith.constant 0 : i32
    return %c0_i32, %c0_i32_0 : i32, i32
  }
  func.func @transform_2(%arg0: i32) -> (i32, i32) {
    %c0_i32 = arith.constant 0 : i32
    %c0_i32_0 = arith.constant 0 : i32
    %c0_i32_1 = arith.constant 0 : i32
    return %c0_i32, %c0_i32_0 : i32, i32
  }
  func.func @transform_3(%arg0: i32) -> (i32, i32) {
    %c0_i32 = arith.constant 0 : i32
    %c0_i32_0 = arith.constant 0 : i32
    %c0_i32_1 = arith.constant 0 : i32
    return %c0_i32, %c0_i32_0 : i32, i32
  }
  func.func @transform_4(%arg0: i32) -> (i32, i32) {
    %c0_i32 = arith.constant 0 : i32
    %c0_i32_0 = arith.constant 0 : i32
    %c0_i32_1 = arith.constant 0 : i32
    return %c0_i32, %c0_i32_0 : i32, i32
  }
  func.func @transform_5(%arg0: i32) -> (i32, i32) {
    %c0_i32 = arith.constant 0 : i32
    %c0_i32_0 = arith.constant 0 : i32
    %c0_i32_1 = arith.constant 0 : i32
    return %c0_i32, %c0_i32_0 : i32, i32
  }
  func.func @transform_6(%arg0: i32) -> (i32, i32) {
    %c0_i32 = arith.constant 0 : i32
    %c0_i32_0 = arith.constant 0 : i32
    %c0_i32_1 = arith.constant 0 : i32
    return %c0_i32, %c0_i32_0 : i32, i32
  }
  func.func @transform_7(%arg0: i32) -> (i32, i32) {
    %c0_i32 = arith.constant 0 : i32
    %c0_i32_0 = arith.constant 0 : i32
    %c0_i32_1 = arith.constant 0 : i32
    return %c0_i32, %c0_i32_0 : i32, i32
  }
  func.func @transform_8(%arg0: i32) -> (i32, i32) {
    %c0_i32 = arith.constant 0 : i32
    %c0_i32_0 = arith.constant 0 : i32
    %c0_i32_1 = arith.constant 0 : i32
    return %c0_i32, %c0_i32_0 : i32, i32
  }
  func.func @transform_9(%arg0: i32) -> (i32, i32) {
    %c0_i32 = arith.constant 0 : i32
    %c0_i32_0 = arith.constant 0 : i32
    return %arg0, %c0_i32 : i32, i32
  }
}

</mosaic_0001>

<bundles_post_ra>
// kernel: tpu_custom_call.1
= control target key start
LH: loop header
LB: loop body
LE: loop exit
PB: predicated region body
PF: predicated region fallthrough
CT: control target
= control target key end

     0   :  { %14 = vsyncpa [#allocation3], 0  ;;  %s3286_s0 = inlined_call_operand.vmem [shape: bf16[512,32], index: 0, kind: input, shape index: {}]   ;;  %s3287_s1 = inlined_call_operand.vmem [shape: bf16[32,128], index: 1, kind: input, shape index: {}]   ;;  %s3288_s2 = inlined_call_operand.vmem [shape: f32[1,128], index: 2, kind: input, shape index: {}]   ;;  %s3289_s3 = inlined_call_operand.vmem [shape: bf16[128,128], index: 3, kind: input, shape index: {}]   ;;  %s3290_s4 = inlined_call_operand.vmem [shape: f32[1,128], index: 4, kind: input, shape index: {}]   ;;  %s3291_s5 = inlined_call_operand.vmem [shape: bf16[128,128], index: 5, kind: input, shape index: {}]   ;;  %s3292_s6 = inlined_call_operand.vmem [shape: f32[1,128], index: 6, kind: input, shape index: {}]   ;;  %s3293_s7 = inlined_call_operand.vmem [shape: bf16[128,128], index: 7, kind: input, shape index: {}]   ;;  %s3294_s8 = inlined_call_operand.vmem [shape: f32[1,128], index: 8, kind: input, shape index: {}]   ;;  %s3295_s9 = inlined_call_operand.hbm [shape: f32[512,128], index: 9, kind: output, shape index: {}]  }
   0x1   :  { %16 = vsyncpa [#allocation3 + $0x1], 0  ;;  %s2605_s30 = smov 0   ;;  %s2607_s10 = smov 0  }
   0x2   :  { %s2609_s11 = smov 0   ;;  %s2611_s12 = smov 0  }
   0x3 LB: > { %s2626_s13 = sadd.s32 4294967295, %s2550_s12   ;;  %s1916_s14 = sadd.s32 4294967294, %s2550_s12   ;;  %s2550_s12 = sphi %s2611_s12, %s3301_s12   ;;  %s2546_s11 = sphi %s2609_s11, %s3300_s11   ;;  %s2542_s10 = sphi %s2607_s10, %s3299_s10   ;;  %s2538_s30 = sphi %s2605_s30, %s3298_s30  }
   0x4   : > { %s2630_s15 = sadd.s32 1, %s2550_s12   ;;  %s223_s16 = sadd.s32 1, %s2546_s11 }
   0x5   : > { %s220_s17 = ssub.s32 %s2550_s12, %s2630_s15  ;;  %p233_p0 = scmp.ne.s32.totalorder %s2546_s11, %s2542_s10 }
   0x6   : > { %p221_p1 = scmp.eq.s32.totalorder %s220_s17, 0  ;;  %p234_p2 = scmp.eq.s32.totalorder %s2626_s13, 1 }
   0x7   : > { %p239_p3 = scmp.ne.s32.totalorder %s2542_s10, %s2538_s30  ;;  %p240_p4 = scmp.eq.s32.totalorder %s1916_s14, 1 }
   0x8   : > { %s2641_s18 = scalar_select %p221_p1, %s2546_s11, %s223_s16  }
   0x9   : > { %p2643_p5 = por %p234_p2, %p233_p0  ;;  %p2647_p6 = por %p240_p4, %p239_p3 }
   0xa   : > { %p1919_p7 = scmp.ge.s32.totalorder %s2550_s12, 1  ;;  %p291_p8 = scmp.lt.s32.totalorder %s2550_s12, 3 }
   0xc   : > { %p292_p9 = pnand %p1919_p7, %p291_p8 }
   0xd   : > { %v2318_v0 = vld [vmem:[%s3287_s1] sm:$0xff] (!%p292_p9)   ;;  %s1921_s23 = sshll.u32 (!%p292_p9), %s2626_s13, 5  ;;  %v2319_v1 = vld [vmem:[%s3287_s1 + $0x8] sm:$0xff] (!%p292_p9)   ;;  %vm470_vm0 = vcmask (!%p292_p9), 261120   ;;  %v2338_v4 = vld [vmem:[%s3289_s3 + $0x10] sm:$0xff] (!%p292_p9)   ;;  %s324_s26 = sand.u32 (!%p292_p9), 1, %s2542_s10  }
   0xe   : > { %295 = sbr.rel (%p292_p9) target bundleno = 1297 (0x511), region = 56  ;;  %p328_p10 = scmp.lt.s32.totalorder (!%p292_p9), %s1921_s23, 63  ;;  %2081 = vmatprep.subr.bf16.mxu0 (!%p292_p9), %v2318_v0  ;;  %v2336_v2 = vld [vmem:[%s3289_s3] sm:$0xff] (!%p292_p9)   ;;  %v2337_v3 = vld [vmem:[%s3289_s3 + $0x8] sm:$0xff] (!%p292_p9)   ;;  %v2339_v8 = vld [vmem:[%s3289_s3 + $0x18] sm:$0xff] (!%p292_p9)  }
   0xf   : > { %2082 = vmatpush3.bf16.msra.mxu0 (!%p292_p9), %v2318_v0  ;;  %2117 = vmatprep.subr.bf16.mxu1 (!%p292_p9), %v2336_v2  ;;  %v2340_v9 = vld [vmem:[%s3289_s3 + $0x20] sm:$0xff] (!%p292_p9)   ;;  %v2341_v14 = vld [vmem:[%s3289_s3 + $0x28] sm:$0xff] (!%p292_p9)   ;;  %v2342_v24 = vld [vmem:[%s3289_s3 + $0x30] sm:$0xff] (!%p292_p9)   ;;  %s1920_s27 = sshll.u32 (!%p292_p9), %s324_s26, 8  ;;  %s1990_s29 = sshll.u32 (!%p292_p9), %s2626_s13, 12 }
  0x10   : > { %2083 = vmatprep.subr.bf16.mxu0 (!%p292_p9), %v2319_v1  ;;  %2118 = vmatpush3.bf16.msra.mxu1 (!%p292_p9), %v2336_v2  ;;  %v2343_v25 = vld [vmem:[%s3289_s3 + $0x38] sm:$0xff] (!%p292_p9)   ;;  %v2344_v26 = vld [vmem:[%s3291_s5] sm:$0xff] (!%p292_p9)   ;;  %v2345_v27 = vld [vmem:[%s3291_s5 + $0x8] sm:$0xff] (!%p292_p9)   ;;  %s3169_s28 = scalar_lea.vmem (!%p292_p9), [#allocation2], %s1920_s27  ;;  %s3237_s22 = scalar_lea.hbm (!%p292_p9), %s3295_s9, %s1990_s29 }
  0x11   : > { %2119 = vmatprep.subr.bf16.mxu1 (!%p292_p9), %v2337_v3  ;;  %v2346_v28 = vld [vmem:[%s3291_s5 + $0x10] sm:$0xff] (!%p292_p9)   ;;  %v2347_v29 = vld [vmem:[%s3291_s5 + $0x18] sm:$0xff] (!%p292_p9)   ;;  %v2348_v30 = vld [vmem:[%s3291_s5 + $0x20] sm:$0xff] (!%p292_p9)   ;;  %s3245_s13 = scalar_lea.sflag (!%p292_p9), [#allocation3], %s324_s26 }
  0x12   : > { %v2349_v31 = vld [vmem:[%s3291_s5 + $0x28] sm:$0xff] (!%p292_p9)   ;;  %v2350_v32 = vld [vmem:[%s3291_s5 + $0x30] sm:$0xff] (!%p292_p9)   ;;  %v2745_v33 = vld [vmem:[%s3288_s2] ss:$0 sm:$0xff] (!%p292_p9) }
  0x13   : > { %2084 = vmatpush3.bf16.msra.mxu0 (!%p292_p9), %v2319_v1 }
  0x14   : > { %2120 = vmatpush3.bf16.msra.mxu1 (!%p292_p9), %v2337_v3  ;;  %2165 = vmatprep.subr.bf16.mxu0 (!%p292_p9), %v2344_v26 }
  0x15   : > { %s3303_s23 = smov (!%p328_p10, %s1921_s23), 63  ;;  %2121 = vmatprep.subr.bf16.mxu1 %v2338_v4 }
  0x16   : > { %s1922_s14 = sshll.u32 %s3303_s23, 2  ;;  %s2552_s23 = smov [#allocation2]  }
  0x17   : > { %s2669_s21 = scalar_lea.vmem %s3286_s0, %s1922_s14  ;;  %s1854_s14 = sshll.u32 %s3169_s28, 4  ;;  %s3239_s14 = int_to_ptr.vmem [resolvable:$true] %s1854_s14 }
  0x18   : > { %v2320_v5 = vld [vmem:[%s2669_s21] sm:$0xff]   ;;  %v2321_v6 = vld [vmem:[%s2669_s21 + $0x8] sm:$0xff]   ;;  %v2322_v7 = vld [vmem:[%s2669_s21 + $0x10] sm:$0xff]   ;;  %2122 = vmatpush3.bf16.msra.mxu1 %v2338_v4  ;;  %s2488_s24 = scalar_lea.vmem %s3239_s14, 4096  ;;  %s2492_s25 = sshll.u32 %s2552_s23, 4  ;;  %s2493_s25 = int_to_ptr.vmem [resolvable:$false] %s2492_s25 }
  0x19   : > { %2085 = vmatprep.mubr.msk.bf16.mxu0 %vm470_vm0, %v2320_v5  ;;  %v2323_v10 = vld [vmem:[%s2669_s21 + $0x18] sm:$0xff]   ;;  %2123 = vmatprep.subr.bf16.mxu1 %v2339_v8  ;;  %v2324_v11 = vld [vmem:[%s2669_s21 + $0x20] sm:$0xff]   ;;  %v2325_v12 = vld [vmem:[%s2669_s21 + $0x28] sm:$0xff]   ;;  %p2489_p11 = scmp.ne.s32.totalorder %s3239_s14, %s2488_s24  ;;  %p2495_p0 = scmp.lt.s32.totalorder %s3239_s14, %s2493_s25 }
  0x1a   : > { %2086 = vmatmul.mubr.msk.bf16.vlgmr.msra.gmra.mrb[0].mxu0 %vm470_vm0, %v2321_v6  ;;  %v2326_v13 = vld [vmem:[%s2669_s21 + $0x30] sm:$0xff]   ;;  %v2327_v15 = vld [vmem:[%s2669_s21 + $0x38] sm:$0xff]   ;;  %v2328_v16 = vld [vmem:[%s2669_s21 + $0x40] sm:$0xff]  }
  0x1b   : > { %2089 = vmatprep.mubr.msk.bf16.mxu0 %vm470_vm0, %v2322_v7  ;;  %v2329_v17 = vld [vmem:[%s2669_s21 + $0x48] sm:$0xff]   ;;  %v2330_v18 = vld [vmem:[%s2669_s21 + $0x50] sm:$0xff]   ;;  %v2331_v19 = vld [vmem:[%s2669_s21 + $0x58] sm:$0xff]   ;;  %2166 = vmatpush3.bf16.msra.mxu0 %v2344_v26  ;;  %p2490_p12 = pnand %p2489_p11, %p2643_p5 }
  0x1c   : > { %2124 = vmatpush3.bf16.msra.mxu1 %v2339_v8  ;;  %v2332_v20 = vld [vmem:[%s2669_s21 + $0x60] sm:$0xff]   ;;  %v2333_v21 = vld [vmem:[%s2669_s21 + $0x68] sm:$0xff]   ;;  %v2334_v22 = vld [vmem:[%s2669_s21 + $0x70] sm:$0xff]   ;;  %2167 = vmatprep.subr.bf16.mxu0 %v2345_v27 }
  0x1d   : > { %2125 = vmatprep.subr.bf16.mxu1 %v2340_v9  ;;  %v2335_v23 = vld [vmem:[%s2669_s21 + $0x78] sm:$0xff]   ;;  %p2491_p13 = pneg %p2490_p12  ;;  %s2494_s21 = scalar_lea.vmem %s2493_s25, 8192 }
  0x1e   : > { %p2496_p1 = scmp.lt.s32.totalorder %s2494_s21, %s2488_s24 }
  0x1f   : > { %2168 = vmatpush3.bf16.msra.mxu0 %v2345_v27 }
  0x20   : > { %2126 = vmatpush3.bf16.msra.mxu1 %v2340_v9  ;;  %2169 = vmatprep.subr.bf16.mxu0 %v2346_v28  ;;  %p2497_p2 = por %p2496_p1, %p2495_p0 }
  0x21   : > { %2127 = vmatprep.subr.bf16.mxu1 %v2341_v14 }
  0x22   : > { %2090 = vmatmul.mubr.msk.bf16.gmra.mrb[4].mxu0 %vm470_vm0, %v2323_v10  ;;  %p2498_p3 = pnand %p2497_p2, %p2491_p13 }
  0x23   : > { %2093 = vmatprep.mubr.msk.bf16.mxu0 %vm470_vm0, %v2324_v11  ;;  %2170 = vmatpush3.bf16.msra.mxu0 %v2346_v28 }
  0x24   : > { %2128 = vmatpush3.bf16.msra.mxu1 %v2341_v14  ;;  %2171 = vmatprep.subr.bf16.mxu0 %v2347_v29 }
  0x25   : > { %2129 = vmatprep.subr.bf16.mxu1 %v2342_v24 }
  0x27   : > { %2172 = vmatpush3.bf16.msra.mxu0 %v2347_v29 }
  0x28   : > { %2130 = vmatpush3.bf16.msra.mxu1 %v2342_v24  ;;  %2173 = vmatprep.subr.bf16.mxu0 %v2348_v30 }
  0x29   : > { %2131 = vmatprep.subr.bf16.mxu1 %v2343_v25 }
  0x2a   : > { %2094 = vmatmul.mubr.msk.bf16.gmra.mrb[8].mxu0 %vm470_vm0, %v2325_v12 }
  0x2b   : > { %2097 = vmatprep.mubr.msk.bf16.mxu0 %vm470_vm0, %v2326_v13  ;;  %2174 = vmatpush3.bf16.msra.mxu0 %v2348_v30 }
  0x2c   : > { %2132 = vmatpush3.bf16.msra.mxu1 %v2343_v25  ;;  %2175 = vmatprep.subr.bf16.mxu0 %v2349_v31 }
  0x2f   : > { %2176 = vmatpush3.bf16.msra.mxu0 %v2349_v31 }
  0x30   : > { %2177 = vmatprep.subr.bf16.mxu0 %v2350_v32 }
  0x32   : > { %2098 = vmatmul.mubr.msk.bf16.gmra.mrb[12].mxu0 %vm470_vm0, %v2327_v15 }
  0x33   : > { %2101 = vmatprep.mubr.msk.bf16.mxu0 %vm470_vm0, %v2328_v16  ;;  %2178 = vmatpush3.bf16.msra.mxu0 %v2350_v32 }
  0x3a   : > { %2102 = vmatmul.mubr.msk.bf16.gmra.mrb[16].mxu0 %vm470_vm0, %v2329_v17 }
  0x3b   : > { %2105 = vmatprep.mubr.msk.bf16.mxu0 %vm470_vm0, %v2330_v18 }
  0x42   : > { %2106 = vmatmul.mubr.msk.bf16.gmra.mrb[20].mxu0 %vm470_vm0, %v2331_v19 }
  0x43   : > { %2109 = vmatprep.mubr.msk.bf16.mxu0 %vm470_vm0, %v2332_v20 }
  0x4a   : > { %2110 = vmatmul.mubr.msk.bf16.gmra.mrb[24].mxu0 %vm470_vm0, %v2333_v21 }
  0x4b   : > { %2113 = vmatprep.mubr.msk.bf16.mxu0 %vm470_vm0, %v2334_v22 }
  0x52   : > { %2114 = vmatmul.mubr.msk.bf16.gmra.mrb[28].mxu0 %vm470_vm0, %v2335_v23 }
  0xed   : > { %v2087_v34 = vpop.f32.mrb[0].mxu0 }
  0xee   : > { %v562_v35 = vadd.f32 %v2087_v34, %v2745_v33  ;;  %v553_v36 = vpop.f32.mrb[1].mxu0 }
  0xef   : > { %v554_v37 = vadd.f32 %v2745_v33, %v553_v36  ;;  %v2088_v38 = vpop.f32.mrb[2].mxu0 }
  0xf0   : > { %v565_v39 = vadd.f32 %v2088_v38, %v2745_v33  ;;  %v556_v40 = vpop.f32.mrb[3].mxu0  ;;  %v682_v42 = vmax.f32 %v562_v35, 0.0 }
  0xf1   : > { %v557_v41 = vadd.f32 %v2745_v33, %v556_v40  ;;  %v680_v44 = vmax.f32 %v554_v37, 0.0 }
  0xf2   : > { %v683_v43 = vmax.f32 %v565_v39, 0.0 }
  0xf3   : > { %v681_v45 = vmax.f32 %v557_v41, 0.0 }
  0xf4   : > { %v713_v46 = vpack.c.bf16 %v683_v43, %v682_v42 }
  0xf5   : > { %v2091_v47 = vpop.f32.mrb[4].mxu0  ;;  %v712_v48 = vpack.c.bf16 %v681_v45, %v680_v44 }
  0xf6   : > { %v578_v49 = vadd.f32 %v2091_v47, %v2745_v33  ;;  %v569_v50 = vpop.f32.mrb[5].mxu0 }
  0xf7   : > { %v570_v51 = vadd.f32 %v2745_v33, %v569_v50  ;;  %v2092_v52 = vpop.f32.mrb[6].mxu0  ;;  %2133 = vmatprep.mubr.bf16.mxu1 %v712_v48 }
  0xf8   : > { %v686_v53 = vmax.f32 %v578_v49, 0.0  ;;  %v581_v54 = vadd.f32 %v2092_v52, %v2745_v33  ;;  %v572_v55 = vpop.f32.mrb[7].mxu0  ;;  %2134 = vmatmul.mubr.bf16.vlgmr.msra.gmra.mrb[0].mxu1 %v713_v46 }
  0xf9   : > { %v573_v56 = vadd.f32 %v2745_v33, %v572_v55  ;;  %v684_v58 = vmax.f32 %v570_v51, 0.0 }
  0xfa   : > { %v687_v57 = vmax.f32 %v581_v54, 0.0 }
  0xfb   : > { %v685_v59 = vmax.f32 %v573_v56, 0.0 }
  0xfc   : > { %v715_v60 = vpack.c.bf16 %v687_v57, %v686_v53 }
  0xfd   : > { %v714_v61 = vpack.c.bf16 %v685_v59, %v684_v58  ;;  %v2095_v62 = vpop.f32.mrb[8].mxu0 }
  0xfe   : > { %v594_v63 = vadd.f32 %v2095_v62, %v2745_v33  ;;  %v585_v0 = vpop.f32.mrb[9].mxu0 }
  0xff   : > { %v586_v1 = vadd.f32 %v2745_v33, %v585_v0  ;;  %v2096_v2 = vpop.f32.mrb[10].mxu0  ;;  %2137 = vmatprep.mubr.bf16.mxu1 %v714_v61 }
 0x100   : > { %v690_v3 = vmax.f32 %v594_v63, 0.0  ;;  %v597_v4 = vadd.f32 %v2096_v2, %v2745_v33  ;;  %v588_v5 = vpop.f32.mrb[11].mxu0  ;;  %2138 = vmatmul.mubr.bf16.gmra.mrb[4].mxu1 %v715_v60 }
 0x101   : > { %v589_v6 = vadd.f32 %v2745_v33, %v588_v5  ;;  %v688_v8 = vmax.f32 %v586_v1, 0.0 }
 0x102   : > { %v691_v7 = vmax.f32 %v597_v4, 0.0 }
 0x103   : > { %v689_v9 = vmax.f32 %v589_v6, 0.0 }
 0x104   : > { %v717_v10 = vpack.c.bf16 %v691_v7, %v690_v3 }
 0x105   : > { %v716_v11 = vpack.c.bf16 %v689_v9, %v688_v8  ;;  %v2099_v12 = vpop.f32.mrb[12].mxu0 }
 0x106   : > { %v610_v13 = vadd.f32 %v2099_v12, %v2745_v33  ;;  %v601_v14 = vpop.f32.mrb[13].mxu0 }
 0x107   : > { %v602_v15 = vadd.f32 %v2745_v33, %v601_v14  ;;  %v2100_v16 = vpop.f32.mrb[14].mxu0  ;;  %2141 = vmatprep.mubr.bf16.mxu1 %v716_v11 }
 0x108   : > { %v694_v17 = vmax.f32 %v610_v13, 0.0  ;;  %v613_v18 = vadd.f32 %v2100_v16, %v2745_v33  ;;  %v604_v19 = vpop.f32.mrb[15].mxu0  ;;  %2142 = vmatmul.mubr.bf16.gmra.mrb[8].mxu1 %v717_v10 }
 0x109   : > { %v605_v20 = vadd.f32 %v2745_v33, %v604_v19  ;;  %v692_v22 = vmax.f32 %v602_v15, 0.0  ;;  %v2351_v19 = vld [vmem:[%s3291_s5 + $0x38] sm:$0xff]  }
 0x10a   : > { %v695_v21 = vmax.f32 %v613_v18, 0.0  ;;  %2179 = vmatprep.subr.bf16.mxu0 %v2351_v19 }
 0x10b   : > { %v693_v23 = vmax.f32 %v605_v20, 0.0  ;;  %2180 = vmatpush3.bf16.msra.mxu0 %v2351_v19  ;;  %v2352_v20 = vld [vmem:[%s3293_s7] sm:$0xff]  }
 0x10c   : > { %v719_v24 = vpack.c.bf16 %v695_v21, %v694_v17  ;;  %2213 = vmatprep.subr.bf16.mxu0 %v2352_v20  ;;  %2261 = vmatprep.subr.bf16.mxu1 %v2352_v20  ;;  %v2354_v21 = vld [vmem:[%s3293_s7 + $0x10] sm:$0xff]  }
 0x10d   : > { %v718_v25 = vpack.c.bf16 %v693_v23, %v692_v22  ;;  %v2103_v26 = vpop.f32.mrb[16].mxu0  ;;  %2269 = vmatpush3.bf16.msra.mxu1 %v2352_v20  ;;  %v2794_v22 = vld [vmem:[%s3293_s7 + $0x18] sm:$0xff]   ;;  %v2800_v23 = vld [vmem:[%s3293_s7 + $0x20] sm:$0xff]  }
 0x10e   : > { %v626_v27 = vadd.f32 %v2103_v26, %v2745_v33  ;;  %v617_v28 = vpop.f32.mrb[17].mxu0  ;;  %v2822_v26 = vld [vmem:[%s3290_s4] ss:$0 sm:$0xff] }
 0x10f   : > { %v618_v29 = vadd.f32 %v2745_v33, %v617_v28  ;;  %v2104_v30 = vpop.f32.mrb[18].mxu0  ;;  %2145 = vmatprep.mubr.bf16.mxu1 %v718_v25  ;;  %v2814_v25 = vld [vmem:[%s3293_s7 + $0x30] sm:$0xff]  }
 0x110   : > { %v698_v31 = vmax.f32 %v626_v27, 0.0  ;;  %v629_v32 = vadd.f32 %v2104_v30, %v2745_v33  ;;  %v620_v34 = vpop.f32.mrb[19].mxu0  ;;  %2146 = vmatmul.mubr.bf16.gmra.mrb[12].mxu1 %v719_v24  ;;  %v2807_v24 = vld [vmem:[%s3293_s7 + $0x28] sm:$0xff]  }
 0x111   : > { %v621_v35 = vadd.f32 %v2745_v33, %v620_v34  ;;  %v696_v37 = vmax.f32 %v618_v29, 0.0 }
 0x112   : > { %v699_v36 = vmax.f32 %v629_v32, 0.0 }
 0x113   : > { %v697_v38 = vmax.f32 %v621_v35, 0.0 }
 0x114   : > { %v721_v39 = vpack.c.bf16 %v699_v36, %v698_v31 }
 0x115   : > { %v720_v40 = vpack.c.bf16 %v697_v38, %v696_v37  ;;  %v2107_v41 = vpop.f32.mrb[20].mxu0 }
 0x116   : > { %v642_v42 = vadd.f32 %v2107_v41, %v2745_v33  ;;  %v633_v43 = vpop.f32.mrb[21].mxu0 }
 0x117   : > { %v634_v44 = vadd.f32 %v2745_v33, %v633_v43  ;;  %v2108_v45 = vpop.f32.mrb[22].mxu0  ;;  %2149 = vmatprep.mubr.bf16.mxu1 %v720_v40 }
 0x118   : > { %v702_v46 = vmax.f32 %v642_v42, 0.0  ;;  %v645_v47 = vadd.f32 %v2108_v45, %v2745_v33  ;;  %v636_v48 = vpop.f32.mrb[23].mxu0  ;;  %2150 = vmatmul.mubr.bf16.gmra.mrb[16].mxu1 %v721_v39 }
 0x119   : > { %v637_v49 = vadd.f32 %v2745_v33, %v636_v48  ;;  %v700_v51 = vmax.f32 %v634_v44, 0.0 }
 0x11a   : > { %v703_v50 = vmax.f32 %v645_v47, 0.0 }
 0x11b   : > { %v701_v52 = vmax.f32 %v637_v49, 0.0 }
 0x11c   : > { %v723_v53 = vpack.c.bf16 %v703_v50, %v702_v46 }
 0x11d   : > { %v722_v54 = vpack.c.bf16 %v701_v52, %v700_v51  ;;  %v2111_v55 = vpop.f32.mrb[24].mxu0 }
 0x11e   : > { %v658_v56 = vadd.f32 %v2111_v55, %v2745_v33  ;;  %v649_v57 = vpop.f32.mrb[25].mxu0 }
 0x11f   : > { %v650_v58 = vadd.f32 %v2745_v33, %v649_v57  ;;  %v2112_v59 = vpop.f32.mrb[26].mxu0  ;;  %2153 = vmatprep.mubr.bf16.mxu1 %v722_v54 }
 0x120   : > { %v706_v60 = vmax.f32 %v658_v56, 0.0  ;;  %v661_v61 = vadd.f32 %v2112_v59, %v2745_v33  ;;  %v652_v62 = vpop.f32.mrb[27].mxu0  ;;  %2154 = vmatmul.mubr.bf16.gmra.mrb[20].mxu1 %v723_v53 }
 0x121   : > { %v653_v63 = vadd.f32 %v2745_v33, %v652_v62  ;;  %v704_v1 = vmax.f32 %v650_v58, 0.0 }
 0x122   : > { %v707_v0 = vmax.f32 %v661_v61, 0.0 }
 0x123   : > { %v705_v2 = vmax.f32 %v653_v63, 0.0 }
 0x124   : > { %v725_v3 = vpack.c.bf16 %v707_v0, %v706_v60 }
 0x125   : > { %v724_v4 = vpack.c.bf16 %v705_v2, %v704_v1  ;;  %v2115_v5 = vpop.f32.mrb[28].mxu0 }
 0x126   : > { %v674_v6 = vadd.f32 %v2115_v5, %v2745_v33  ;;  %v665_v7 = vpop.f32.mrb[29].mxu0 }
 0x127   : > { %v666_v8 = vadd.f32 %v2745_v33, %v665_v7  ;;  %v2116_v9 = vpop.f32.mrb[30].mxu0  ;;  %2157 = vmatprep.mubr.bf16.mxu1 %v724_v4 }
 0x128   : > { %v710_v10 = vmax.f32 %v674_v6, 0.0  ;;  %v677_v11 = vadd.f32 %v2116_v9, %v2745_v33  ;;  %v668_v12 = vpop.f32.mrb[31].mxu0  ;;  %2158 = vmatmul.mubr.bf16.gmra.mrb[24].mxu1 %v725_v3 }
 0x129   : > { %v669_v13 = vadd.f32 %v2745_v33, %v668_v12  ;;  %v708_v15 = vmax.f32 %v666_v8, 0.0  ;;  %v2353_v33 = vld [vmem:[%s3293_s7 + $0x8] sm:$0xff]  }
 0x12a   : > { %v711_v14 = vmax.f32 %v677_v11, 0.0  ;;  %2262 = vmatprep.subr.bf16.mxu1 %v2353_v33 }
 0x12b   : > { %v709_v16 = vmax.f32 %v669_v13, 0.0  ;;  %2270 = vmatpush3.bf16.msra.mxu1 %v2353_v33 }
 0x12c   : > { %v727_v17 = vpack.c.bf16 %v711_v14, %v710_v10  ;;  %2263 = vmatprep.subr.bf16.mxu1 %v2354_v21 }
 0x12d   : > { %v726_v18 = vpack.c.bf16 %v709_v16, %v708_v15 }
 0x12f   : > { %2161 = vmatprep.mubr.bf16.mxu1 %v726_v18  ;;  %2271 = vmatpush3.bf16.msra.mxu1 %v2354_v21 }
 0x130   : > { %2162 = vmatmul.mubr.bf16.gmra.mrb[28].mxu1 %v727_v17  ;;  %2264 = vmatprep.subr.bf16.mxu1 %v2794_v22 }
 0x133   : > { %2272 = vmatpush3.bf16.msra.mxu1 %v2794_v22 }
 0x134   : > { %2265 = vmatprep.subr.bf16.mxu1 %v2800_v23 }
 0x137   : > { %2273 = vmatpush3.bf16.msra.mxu1 %v2800_v23 }
 0x138   : > { %2266 = vmatprep.subr.bf16.mxu1 %v2807_v24 }
 0x13b   : > { %2274 = vmatpush3.bf16.msra.mxu1 %v2807_v24 }
 0x13c   : > { %2267 = vmatprep.subr.bf16.mxu1 %v2814_v25 }
 0x13f   : > { %2275 = vmatpush3.bf16.msra.mxu1 %v2814_v25 }
 0x1cb   : > { %v2135_v27 = vpop.f32.mrb[0].mxu1 }
 0x1cc   : > { %v842_v28 = vadd.f32 %v2135_v27, %v2822_v26  ;;  %v833_v29 = vpop.f32.mrb[1].mxu1 }
 0x1cd   : > { %v834_v30 = vadd.f32 %v2822_v26, %v833_v29  ;;  %v2136_v31 = vpop.f32.mrb[2].mxu1 }
 0x1ce   : > { %v845_v32 = vadd.f32 %v2136_v31, %v2822_v26  ;;  %v836_v34 = vpop.f32.mrb[3].mxu1  ;;  %v962_v36 = vmax.f32 %v842_v28, 0.0 }
 0x1cf   : > { %v837_v35 = vadd.f32 %v2822_v26, %v836_v34  ;;  %v960_v38 = vmax.f32 %v834_v30, 0.0 }
 0x1d0   : > { %v963_v37 = vmax.f32 %v845_v32, 0.0 }
 0x1d1   : > { %v961_v39 = vmax.f32 %v837_v35, 0.0 }
 0x1d2   : > { %v993_v40 = vpack.c.bf16 %v963_v37, %v962_v36 }
 0x1d3   : > { %v992_v41 = vpack.c.bf16 %v961_v39, %v960_v38  ;;  %v2139_v42 = vpop.f32.mrb[4].mxu1 }
 0x1d4   : > { %v858_v43 = vadd.f32 %v2139_v42, %v2822_v26  ;;  %v849_v44 = vpop.f32.mrb[5].mxu1 }
 0x1d5   : > { %v850_v45 = vadd.f32 %v2822_v26, %v849_v44  ;;  %v2140_v46 = vpop.f32.mrb[6].mxu1  ;;  %2181 = vmatprep.mubr.bf16.mxu0 %v992_v41 }
 0x1d6   : > { %v861_v47 = vadd.f32 %v2140_v46, %v2822_v26  ;;  %v852_v48 = vpop.f32.mrb[7].mxu1  ;;  %2182 = vmatmul.mubr.bf16.vlgmr.msra.gmra.mrb[32].mxu0 %v993_v40  ;;  %v966_v50 = vmax.f32 %v858_v43, 0.0 }
 0x1d7   : > { %v853_v49 = vadd.f32 %v2822_v26, %v852_v48  ;;  %2214 = vmatpush3.bf16.msra.mxu0 %v2352_v20  ;;  %v964_v52 = vmax.f32 %v850_v45, 0.0 }
 0x1d8   : > { %v967_v51 = vmax.f32 %v861_v47, 0.0  ;;  %2215 = vmatprep.subr.bf16.mxu0 %v2353_v33 }
 0x1d9   : > { %v965_v53 = vmax.f32 %v853_v49, 0.0 }
 0x1da   : > { %v995_v54 = vpack.c.bf16 %v967_v51, %v966_v50 }
 0x1db   : > { %v994_v55 = vpack.c.bf16 %v965_v53, %v964_v52  ;;  %v2143_v56 = vpop.f32.mrb[8].mxu1  ;;  %2216 = vmatpush3.bf16.msra.mxu0 %v2353_v33 }
 0x1dc   : > { %v874_v57 = vadd.f32 %v2143_v56, %v2822_v26  ;;  %v865_v58 = vpop.f32.mrb[9].mxu1  ;;  %2217 = vmatprep.subr.bf16.mxu0 %v2354_v21 }
 0x1dd   : > { %v866_v59 = vadd.f32 %v2822_v26, %v865_v58  ;;  %v2144_v60 = vpop.f32.mrb[10].mxu1  ;;  %2185 = vmatprep.mubr.bf16.mxu0 %v994_v55 }
 0x1de   : > { %v877_v61 = vadd.f32 %v2144_v60, %v2822_v26  ;;  %v868_v62 = vpop.f32.mrb[11].mxu1  ;;  %2186 = vmatmul.mubr.bf16.gmra.mrb[36].mxu0 %v995_v54  ;;  %v970_v0 = vmax.f32 %v874_v57, 0.0 }
 0x1df   : > { %v869_v63 = vadd.f32 %v2822_v26, %v868_v62  ;;  %2218 = vmatpush3.bf16.msra.mxu0 %v2354_v21  ;;  %v968_v2 = vmax.f32 %v866_v59, 0.0 }
 0x1e0   : > { %v971_v1 = vmax.f32 %v877_v61, 0.0  ;;  %2219 = vmatprep.subr.bf16.mxu0 %v2794_v22 }
 0x1e1   : > { %v969_v3 = vmax.f32 %v869_v63, 0.0 }
 0x1e2   : > { %v997_v4 = vpack.c.bf16 %v971_v1, %v970_v0 }
 0x1e3   : > { %v996_v5 = vpack.c.bf16 %v969_v3, %v968_v2  ;;  %v2147_v6 = vpop.f32.mrb[12].mxu1  ;;  %2220 = vmatpush3.bf16.msra.mxu0 %v2794_v22 }
 0x1e4   : > { %v890_v7 = vadd.f32 %v2147_v6, %v2822_v26  ;;  %v881_v8 = vpop.f32.mrb[13].mxu1  ;;  %2221 = vmatprep.subr.bf16.mxu0 %v2800_v23 }
 0x1e5   : > { %v882_v9 = vadd.f32 %v2822_v26, %v881_v8  ;;  %v2148_v10 = vpop.f32.mrb[14].mxu1  ;;  %2189 = vmatprep.mubr.bf16.mxu0 %v996_v5 }
 0x1e6   : > { %v893_v11 = vadd.f32 %v2148_v10, %v2822_v26  ;;  %v884_v12 = vpop.f32.mrb[15].mxu1  ;;  %2190 = vmatmul.mubr.bf16.gmra.mrb[40].mxu0 %v997_v4  ;;  %v974_v14 = vmax.f32 %v890_v7, 0.0 }
 0x1e7   : > { %v885_v13 = vadd.f32 %v2822_v26, %v884_v12  ;;  %2222 = vmatpush3.bf16.msra.mxu0 %v2800_v23  ;;  %v972_v16 = vmax.f32 %v882_v9, 0.0 }
 0x1e8   : > { %v975_v15 = vmax.f32 %v893_v11, 0.0  ;;  %2223 = vmatprep.subr.bf16.mxu0 %v2807_v24 }
 0x1e9   : > { %v973_v17 = vmax.f32 %v885_v13, 0.0  ;;  %v2359_v13 = vld [vmem:[%s3293_s7 + $0x38] sm:$0xff]  }
 0x1ea   : > { %v999_v18 = vpack.c.bf16 %v975_v15, %v974_v14  ;;  %2268 = vmatprep.subr.bf16.mxu1 %v2359_v13 }
 0x1eb   : > { %v998_v19 = vpack.c.bf16 %v973_v17, %v972_v16  ;;  %v2151_v20 = vpop.f32.mrb[16].mxu1  ;;  %2224 = vmatpush3.bf16.msra.mxu0 %v2807_v24  ;;  %2276 = vmatpush3.bf16.msra.mxu1 %v2359_v13 }
 0x1ec   : > { %v906_v33 = vadd.f32 %v2151_v20, %v2822_v26  ;;  %v897_v21 = vpop.f32.mrb[17].mxu1  ;;  %2225 = vmatprep.subr.bf16.mxu0 %v2814_v25 }
 0x1ed   : > { %v898_v22 = vadd.f32 %v2822_v26, %v897_v21  ;;  %v2152_v27 = vpop.f32.mrb[18].mxu1  ;;  %2193 = vmatprep.mubr.bf16.mxu0 %v998_v19 }
 0x1ee   : > { %v909_v23 = vadd.f32 %v2152_v27, %v2822_v26  ;;  %v900_v28 = vpop.f32.mrb[19].mxu1  ;;  %2194 = vmatmul.mubr.bf16.gmra.mrb[44].mxu0 %v999_v18  ;;  %v978_v30 = vmax.f32 %v906_v33, 0.0 }
 0x1ef   : > { %v901_v29 = vadd.f32 %v2822_v26, %v900_v28  ;;  %2226 = vmatpush3.bf16.msra.mxu0 %v2814_v25  ;;  %v976_v24 = vmax.f32 %v898_v22, 0.0 }
 0x1f0   : > { %v979_v31 = vmax.f32 %v909_v23, 0.0  ;;  %2227 = vmatprep.subr.bf16.mxu0 %v2359_v13 }
 0x1f1   : > { %v977_v32 = vmax.f32 %v901_v29, 0.0 }
 0x1f2   : > { %v1001_v34 = vpack.c.bf16 %v979_v31, %v978_v30 }
 0x1f3   : > { %v1000_v35 = vpack.c.bf16 %v977_v32, %v976_v24  ;;  %v2155_v36 = vpop.f32.mrb[20].mxu1  ;;  %2228 = vmatpush3.bf16.msra.mxu0 %v2359_v13 }
 0x1f4   : > { %v922_v37 = vadd.f32 %v2155_v36, %v2822_v26  ;;  %v913_v38 = vpop.f32.mrb[21].mxu1 }
 0x1f5   : > { %v914_v39 = vadd.f32 %v2822_v26, %v913_v38  ;;  %v2156_v40 = vpop.f32.mrb[22].mxu1  ;;  %2197 = vmatprep.mubr.bf16.mxu0 %v1000_v35 }
 0x1f6   : > { %v925_v41 = vadd.f32 %v2156_v40, %v2822_v26  ;;  %v916_v42 = vpop.f32.mrb[23].mxu1  ;;  %2198 = vmatmul.mubr.bf16.gmra.mrb[48].mxu0 %v1001_v34  ;;  %v982_v43 = vmax.f32 %v922_v37, 0.0 }
 0x1f7   : > { %v917_v25 = vadd.f32 %v2822_v26, %v916_v42  ;;  %v980_v45 = vmax.f32 %v914_v39, 0.0 }
 0x1f8   : > { %v983_v44 = vmax.f32 %v925_v41, 0.0 }
 0x1f9   : > { %v981_v46 = vmax.f32 %v917_v25, 0.0 }
 0x1fa   : > { %v1003_v47 = vpack.c.bf16 %v983_v44, %v982_v43 }
 0x1fb   : > { %v1002_v48 = vpack.c.bf16 %v981_v46, %v980_v45  ;;  %v2159_v49 = vpop.f32.mrb[24].mxu1 }
 0x1fc   : > { %v938_v50 = vadd.f32 %v2159_v49, %v2822_v26  ;;  %v929_v51 = vpop.f32.mrb[25].mxu1 }
 0x1fd   : > { %v930_v52 = vadd.f32 %v2822_v26, %v929_v51  ;;  %v2160_v53 = vpop.f32.mrb[26].mxu1  ;;  %2201 = vmatprep.mubr.bf16.mxu0 %v1002_v48 }
 0x1fe   : > { %v941_v54 = vadd.f32 %v2160_v53, %v2822_v26  ;;  %v932_v55 = vpop.f32.mrb[27].mxu1  ;;  %2202 = vmatmul.mubr.bf16.gmra.mrb[52].mxu0 %v1003_v47  ;;  %v986_v57 = vmax.f32 %v938_v50, 0.0 }
 0x1ff   : > { %v933_v56 = vadd.f32 %v2822_v26, %v932_v55  ;;  %v984_v59 = vmax.f32 %v930_v52, 0.0 }
 0x200   : > { %v987_v58 = vmax.f32 %v941_v54, 0.0 }
 0x201   : > { %v985_v60 = vmax.f32 %v933_v56, 0.0 }
 0x202   : > { %v1005_v61 = vpack.c.bf16 %v987_v58, %v986_v57 }
 0x203   : > { %v1004_v62 = vpack.c.bf16 %v985_v60, %v984_v59  ;;  %v2163_v63 = vpop.f32.mrb[28].mxu1 }
 0x204   : > { %v954_v0 = vadd.f32 %v2163_v63, %v2822_v26  ;;  %v945_v1 = vpop.f32.mrb[29].mxu1 }
 0x205   : > { %v946_v2 = vadd.f32 %v2822_v26, %v945_v1  ;;  %v2164_v3 = vpop.f32.mrb[30].mxu1  ;;  %2205 = vmatprep.mubr.bf16.mxu0 %v1004_v62 }
 0x206   : > { %v957_v4 = vadd.f32 %v2164_v3, %v2822_v26  ;;  %v948_v5 = vpop.f32.mrb[31].mxu1  ;;  %2206 = vmatmul.mubr.bf16.gmra.mrb[56].mxu0 %v1005_v61  ;;  %v990_v7 = vmax.f32 %v954_v0, 0.0 }
 0x207   : > { %v949_v6 = vadd.f32 %v2822_v26, %v948_v5  ;;  %v988_v9 = vmax.f32 %v946_v2, 0.0  ;;  %v2870_v26 = vld [vmem:[%s3292_s6] ss:$0 sm:$0xff] }
 0x208   : > { %v991_v8 = vmax.f32 %v957_v4, 0.0 }
 0x209   : > { %v989_v10 = vmax.f32 %v949_v6, 0.0 }
 0x20a   : > { %v1007_v11 = vpack.c.bf16 %v991_v8, %v990_v7 }
 0x20b   : > { %v1006_v12 = vpack.c.bf16 %v989_v10, %v988_v9 }
 0x20d   : > { %2209 = vmatprep.mubr.bf16.mxu0 %v1006_v12 }
 0x20e   : > { %2210 = vmatmul.mubr.bf16.gmra.mrb[60].mxu0 %v1007_v11 }
 0x2a9   : > { %v2183_v14 = vpop.f32.mrb[32].mxu0 }
 0x2aa   : > { %v1122_v15 = vadd.f32 %v2183_v14, %v2870_v26  ;;  %v1113_v16 = vpop.f32.mrb[33].mxu0 }
 0x2ab   : > { %v1114_v17 = vadd.f32 %v2870_v26, %v1113_v16  ;;  %v2184_v18 = vpop.f32.mrb[34].mxu0 }
 0x2ac   : > { %v1125_v19 = vadd.f32 %v2184_v18, %v2870_v26  ;;  %v1116_v20 = vpop.f32.mrb[35].mxu0  ;;  %v1242_v21 = vmax.f32 %v1122_v15, 0.0 }
 0x2ad   : > { %v1117_v33 = vadd.f32 %v2870_v26, %v1116_v20  ;;  %v1240_v27 = vmax.f32 %v1114_v17, 0.0 }
 0x2ae   : > { %v1243_v22 = vmax.f32 %v1125_v19, 0.0 }
 0x2af   : > { %v1241_v23 = vmax.f32 %v1117_v33, 0.0 }
 0x2b0   : > { %v1273_v28 = vpack.c.bf16 %v1243_v22, %v1242_v21 }
 0x2b1   : > { %v1272_v29 = vpack.c.bf16 %v1241_v23, %v1240_v27  ;;  %v2187_v30 = vpop.f32.mrb[36].mxu0 }
 0x2b2   : > { %v1138_v31 = vadd.f32 %v2187_v30, %v2870_v26  ;;  %v1129_v24 = vpop.f32.mrb[37].mxu0 }
 0x2b3   : > { %v1130_v32 = vadd.f32 %v2870_v26, %v1129_v24  ;;  %v2188_v34 = vpop.f32.mrb[38].mxu0  ;;  %2229 = vmatprep.mubr.bf16.mxu0 %v1272_v29 }
 0x2b4   : > { %v1141_v35 = vadd.f32 %v2188_v34, %v2870_v26  ;;  %v1132_v36 = vpop.f32.mrb[39].mxu0  ;;  %2230 = vmatmul.mubr.bf16.vlgmr.msra.gmra.mrb[64].mxu0 %v1273_v28  ;;  %v1246_v38 = vmax.f32 %v1138_v31, 0.0 }
 0x2b5   : > { %v1133_v37 = vadd.f32 %v2870_v26, %v1132_v36  ;;  %v1244_v40 = vmax.f32 %v1130_v32, 0.0 }
 0x2b6   : > { %v1247_v39 = vmax.f32 %v1141_v35, 0.0 }
 0x2b7   : > { %v1245_v41 = vmax.f32 %v1133_v37, 0.0 }
 0x2b8   : > { %v1275_v42 = vpack.c.bf16 %v1247_v39, %v1246_v38 }
 0x2b9   : > { %v1274_v25 = vpack.c.bf16 %v1245_v41, %v1244_v40  ;;  %v2191_v43 = vpop.f32.mrb[40].mxu0 }
 0x2ba   : > { %v1154_v44 = vadd.f32 %v2191_v43, %v2870_v26  ;;  %v1145_v45 = vpop.f32.mrb[41].mxu0 }
 0x2bb   : > { %v1146_v46 = vadd.f32 %v2870_v26, %v1145_v45  ;;  %v2192_v47 = vpop.f32.mrb[42].mxu0  ;;  %2233 = vmatprep.mubr.bf16.mxu1 %v1274_v25 }
 0x2bc   : > { %v1157_v48 = vadd.f32 %v2192_v47, %v2870_v26  ;;  %v1148_v49 = vpop.f32.mrb[43].mxu0  ;;  %2234 = vmatmul.mubr.bf16.vlgmr.msra.gmra.mrb[32].mxu1 %v1275_v42  ;;  %v1250_v51 = vmax.f32 %v1154_v44, 0.0 }
 0x2bd   : > { %v1149_v50 = vadd.f32 %v2870_v26, %v1148_v49  ;;  %v1248_v53 = vmax.f32 %v1146_v46, 0.0 }
 0x2be   : > { %v1251_v52 = vmax.f32 %v1157_v48, 0.0 }
 0x2bf   : > { %v1249_v54 = vmax.f32 %v1149_v50, 0.0 }
 0x2c0   : > { %v1277_v55 = vpack.c.bf16 %v1251_v52, %v1250_v51 }
 0x2c1   : > { %v1276_v56 = vpack.c.bf16 %v1249_v54, %v1248_v53  ;;  %v2195_v57 = vpop.f32.mrb[44].mxu0 }
 0x2c2   : > { %v1170_v58 = vadd.f32 %v2195_v57, %v2870_v26  ;;  %v1161_v59 = vpop.f32.mrb[45].mxu0 }
 0x2c3   : > { %v1162_v60 = vadd.f32 %v2870_v26, %v1161_v59  ;;  %v2196_v61 = vpop.f32.mrb[46].mxu0  ;;  %2237 = vmatprep.mubr.bf16.mxu1 %v1276_v56 }
 0x2c4   : > { %v1173_v62 = vadd.f32 %v2196_v61, %v2870_v26  ;;  %v1164_v63 = vpop.f32.mrb[47].mxu0  ;;  %2238 = vmatmul.mubr.bf16.gmra.mrb[36].mxu1 %v1277_v55  ;;  %v1254_v1 = vmax.f32 %v1170_v58, 0.0 }
 0x2c5   : > { %v1165_v0 = vadd.f32 %v2870_v26, %v1164_v63  ;;  %v1252_v3 = vmax.f32 %v1162_v60, 0.0 }
 0x2c6   : > { %v1255_v2 = vmax.f32 %v1173_v62, 0.0 }
 0x2c7   : > { %v1253_v4 = vmax.f32 %v1165_v0, 0.0  ;;  %v2907_v0 = vld [vmem:[%s3294_s8] ss:$0 sm:$0xff] }
 0x2c8   : > { %v1279_v5 = vpack.c.bf16 %v1255_v2, %v1254_v1 }
 0x2c9   : > { %v1278_v6 = vpack.c.bf16 %v1253_v4, %v1252_v3  ;;  %v2199_v7 = vpop.f32.mrb[48].mxu0 }
 0x2ca   : > { %v1186_v8 = vadd.f32 %v2199_v7, %v2870_v26  ;;  %v1177_v9 = vpop.f32.mrb[49].mxu0 }
 0x2cb   : > { %v1178_v10 = vadd.f32 %v2870_v26, %v1177_v9  ;;  %v2200_v11 = vpop.f32.mrb[50].mxu0  ;;  %2241 = vmatprep.mubr.bf16.mxu1 %v1278_v6 }
 0x2cc   : > { %v1189_v12 = vadd.f32 %v2200_v11, %v2870_v26  ;;  %v1180_v13 = vpop.f32.mrb[51].mxu0  ;;  %2242 = vmatmul.mubr.bf16.gmra.mrb[40].mxu1 %v1279_v5  ;;  %v1258_v15 = vmax.f32 %v1186_v8, 0.0 }
 0x2cd   : > { %v1181_v14 = vadd.f32 %v2870_v26, %v1180_v13  ;;  %v1256_v17 = vmax.f32 %v1178_v10, 0.0 }
 0x2ce   : > { %v1259_v16 = vmax.f32 %v1189_v12, 0.0 }
 0x2cf   : > { %v1257_v18 = vmax.f32 %v1181_v14, 0.0 }
 0x2d0   : > { %v1281_v19 = vpack.c.bf16 %v1259_v16, %v1258_v15 }
 0x2d1   : > { %v1280_v20 = vpack.c.bf16 %v1257_v18, %v1256_v17  ;;  %v2203_v33 = vpop.f32.mrb[52].mxu0 }
 0x2d2   : > { %v1202_v21 = vadd.f32 %v2203_v33, %v2870_v26  ;;  %v1193_v22 = vpop.f32.mrb[53].mxu0 }
 0x2d3   : > { %v1194_v27 = vadd.f32 %v2870_v26, %v1193_v22  ;;  %v2204_v23 = vpop.f32.mrb[54].mxu0  ;;  %2245 = vmatprep.mubr.bf16.mxu1 %v1280_v20 }
 0x2d4   : > { %v1205_v28 = vadd.f32 %v2204_v23, %v2870_v26  ;;  %v1196_v29 = vpop.f32.mrb[55].mxu0  ;;  %2246 = vmatmul.mubr.bf16.gmra.mrb[44].mxu1 %v1281_v19  ;;  %v1262_v31 = vmax.f32 %v1202_v21, 0.0 }
 0x2d5   : > { %v1197_v30 = vadd.f32 %v2870_v26, %v1196_v29  ;;  %v1260_v32 = vmax.f32 %v1194_v27, 0.0 }
 0x2d6   : > { %v1263_v24 = vmax.f32 %v1205_v28, 0.0 }
 0x2d7   : > { %v1261_v34 = vmax.f32 %v1197_v30, 0.0 }
 0x2d8   : > { %v1283_v35 = vpack.c.bf16 %v1263_v24, %v1262_v31 }
 0x2d9   : > { %v1282_v36 = vpack.c.bf16 %v1261_v34, %v1260_v32  ;;  %v2207_v37 = vpop.f32.mrb[56].mxu0 }
 0x2da   : > { %v1218_v38 = vadd.f32 %v2207_v37, %v2870_v26  ;;  %v1209_v39 = vpop.f32.mrb[57].mxu0 }
 0x2db   : > { %v1210_v40 = vadd.f32 %v2870_v26, %v1209_v39  ;;  %v2208_v41 = vpop.f32.mrb[58].mxu0  ;;  %2249 = vmatprep.mubr.bf16.mxu1 %v1282_v36 }
 0x2dc   : > { %v1221_v42 = vadd.f32 %v2208_v41, %v2870_v26  ;;  %v1212_v25 = vpop.f32.mrb[59].mxu0  ;;  %2250 = vmatmul.mubr.bf16.gmra.mrb[48].mxu1 %v1283_v35  ;;  %v1266_v44 = vmax.f32 %v1218_v38, 0.0 }
 0x2dd   : > { %v1213_v43 = vadd.f32 %v2870_v26, %v1212_v25  ;;  %v1264_v46 = vmax.f32 %v1210_v40, 0.0 }
 0x2de   : > { %v1267_v45 = vmax.f32 %v1221_v42, 0.0 }
 0x2df   : > { %v1265_v47 = vmax.f32 %v1213_v43, 0.0 }
 0x2e0   : > { %v1285_v48 = vpack.c.bf16 %v1267_v45, %v1266_v44 }
 0x2e1   : > { %v1284_v49 = vpack.c.bf16 %v1265_v47, %v1264_v46  ;;  %v2211_v50 = vpop.f32.mrb[60].mxu0 }
 0x2e2   : > { %v1234_v51 = vadd.f32 %v2211_v50, %v2870_v26  ;;  %v1225_v52 = vpop.f32.mrb[61].mxu0 }
 0x2e3   : > { %v1226_v53 = vadd.f32 %v2870_v26, %v1225_v52  ;;  %v2212_v54 = vpop.f32.mrb[62].mxu0  ;;  %2253 = vmatprep.mubr.bf16.mxu1 %v1284_v49 }
 0x2e4   : > { %v1237_v55 = vadd.f32 %v2212_v54, %v2870_v26  ;;  %v1228_v56 = vpop.f32.mrb[63].mxu0  ;;  %2254 = vmatmul.mubr.bf16.gmra.mrb[52].mxu1 %v1285_v48  ;;  %v1270_v58 = vmax.f32 %v1234_v51, 0.0 }
 0x2e5   : > { %v1229_v57 = vadd.f32 %v2870_v26, %v1228_v56  ;;  %v1268_v60 = vmax.f32 %v1226_v53, 0.0 }
 0x2e6   : > { %v1271_v59 = vmax.f32 %v1237_v55, 0.0 }
 0x2e7   : > { %v1269_v61 = vmax.f32 %v1229_v57, 0.0 }
 0x2e8   : > { %v1287_v62 = vpack.c.bf16 %v1271_v59, %v1270_v58 }
 0x2e9   : > { %v1286_v63 = vpack.c.bf16 %v1269_v61, %v1268_v60 }
 0x2eb   : > { %2257 = vmatprep.mubr.bf16.mxu1 %v1286_v63 }
 0x2ec   : > { %2258 = vmatmul.mubr.bf16.gmra.mrb[56].mxu1 %v1287_v62 }
 0x387   : > { %v2231_v1 = vpop.f32.mrb[64].mxu0 }
 0x388   : > { %v2910_v2 = vadd.f32 %v2231_v1, %v2907_v0  ;;  %v1393_v3 = vpop.f32.mrb[65].mxu0 }
 0x389   : > { %v2913_v26 = vadd.f32 %v2907_v0, %v1393_v3  ;;  %v2232_v4 = vpop.f32.mrb[66].mxu0 }
 0x38a   : > { %1524 = vmax.xlane.f32.xlu1 %v2910_v2  ;;  %v1396_v5 = vpop.f32.mrb[67].mxu0  ;;  %v2918_v6 = vadd.f32 %v2232_v4, %v2907_v0 }
 0x38b   : > { %1520 = vmax.xlane.f32.xlu0 %v2913_v26  ;;  %v2921_v7 = vadd.f32 %v2907_v0, %v1396_v5 }
 0x38e   : > { %1526 = vmax.xlane.f32.xlu1 %v2918_v6 }
 0x38f   : > { %v2235_v8 = vpop.f32.mrb[32].mxu1  ;;  %1522 = vmax.xlane.f32.xlu0 %v2921_v7 }
 0x390   : > { %v2926_v9 = vadd.f32 %v2235_v8, %v2907_v0  ;;  %v1409_v10 = vpop.f32.mrb[33].mxu1 }
 0x391   : > { %v2236_v11 = vpop.f32.mrb[34].mxu1  ;;  %v2934_v14 = vadd.f32 %v2907_v0, %v1409_v10 }
 0x392   : > { %v2929_v12 = vadd.f32 %v2236_v11, %v2907_v0  ;;  %v1412_v13 = vpop.f32.mrb[35].mxu1 }
 0x393   : > { %1532 = vmax.xlane.f32.xlu0 %v2926_v9  ;;  %v2937_v15 = vadd.f32 %v2907_v0, %v1412_v13 }
 0x394   : > { %1534 = vmax.xlane.f32.xlu1 %v2929_v12 }
 0x397   : > { %v2239_v16 = vpop.f32.mrb[36].mxu1  ;;  %1528 = vmax.xlane.f32.xlu0 %v2934_v14 }
 0x398   : > { %v2941_v17 = vadd.f32 %v2239_v16, %v2907_v0  ;;  %v1425_v18 = vpop.f32.mrb[37].mxu1  ;;  %1530 = vmax.xlane.f32.xlu1 %v2937_v15 }
 0x399   : > { %v2240_v19 = vpop.f32.mrb[38].mxu1  ;;  %v2950_v21 = vadd.f32 %v2907_v0, %v1425_v18 }
 0x39a   : > { %v2945_v20 = vadd.f32 %v2240_v19, %v2907_v0  ;;  %v1428_v33 = vpop.f32.mrb[39].mxu1 }
 0x39b   : > { %1540 = vmax.xlane.f32.xlu0 %v2941_v17  ;;  %v2953_v22 = vadd.f32 %v2907_v0, %v1428_v33 }
 0x39c   : > { %1542 = vmax.xlane.f32.xlu1 %v2945_v20 }
 0x39f   : > { %v2243_v27 = vpop.f32.mrb[40].mxu1  ;;  %1536 = vmax.xlane.f32.xlu0 %v2950_v21 }
 0x3a0   : > { %v2957_v23 = vadd.f32 %v2243_v27, %v2907_v0  ;;  %v1441_v28 = vpop.f32.mrb[41].mxu1  ;;  %1538 = vmax.xlane.f32.xlu1 %v2953_v22 }
 0x3a1   : > { %v2244_v29 = vpop.f32.mrb[42].mxu1  ;;  %v2966_v24 = vadd.f32 %v2907_v0, %v1441_v28 }
 0x3a2   : > { %v2961_v30 = vadd.f32 %v2244_v29, %v2907_v0  ;;  %v1444_v31 = vpop.f32.mrb[43].mxu1 }
 0x3a3   : > { %1548 = vmax.xlane.f32.xlu0 %v2957_v23  ;;  %v2969_v32 = vadd.f32 %v2907_v0, %v1444_v31 }
 0x3a4   : > { %1550 = vmax.xlane.f32.xlu1 %v2961_v30 }
 0x3a7   : > { %v2247_v34 = vpop.f32.mrb[44].mxu1  ;;  %1544 = vmax.xlane.f32.xlu0 %v2966_v24 }
 0x3a8   : > { %v2973_v35 = vadd.f32 %v2247_v34, %v2907_v0  ;;  %v1457_v36 = vpop.f32.mrb[45].mxu1  ;;  %1546 = vmax.xlane.f32.xlu1 %v2969_v32 }
 0x3a9   : > { %v2248_v37 = vpop.f32.mrb[46].mxu1  ;;  %v2982_v40 = vadd.f32 %v2907_v0, %v1457_v36 }
 0x3aa   : > { %v2977_v38 = vadd.f32 %v2248_v37, %v2907_v0  ;;  %v1460_v39 = vpop.f32.mrb[47].mxu1 }
 0x3ab   : > { %1556 = vmax.xlane.f32.xlu0 %v2973_v35  ;;  %v2985_v41 = vadd.f32 %v2907_v0, %v1460_v39 }
 0x3ac   : > { %1558 = vmax.xlane.f32.xlu1 %v2977_v38 }
 0x3af   : > { %v2251_v42 = vpop.f32.mrb[48].mxu1  ;;  %1552 = vmax.xlane.f32.xlu0 %v2982_v40 }
 0x3b0   : > { %v2989_v25 = vadd.f32 %v2251_v42, %v2907_v0  ;;  %v1473_v43 = vpop.f32.mrb[49].mxu1  ;;  %1554 = vmax.xlane.f32.xlu1 %v2985_v41 }
 0x3b1   : > { %v2252_v44 = vpop.f32.mrb[50].mxu1  ;;  %v2998_v47 = vadd.f32 %v2907_v0, %v1473_v43 }
 0x3b2   : > { %v2993_v45 = vadd.f32 %v2252_v44, %v2907_v0  ;;  %v1476_v46 = vpop.f32.mrb[51].mxu1 }
 0x3b3   : > { %1564 = vmax.xlane.f32.xlu0 %v2989_v25  ;;  %v3001_v48 = vadd.f32 %v2907_v0, %v1476_v46 }
 0x3b4   : > { %1566 = vmax.xlane.f32.xlu1 %v2993_v45 }
 0x3b7   : > { %v2255_v49 = vpop.f32.mrb[52].mxu1  ;;  %1560 = vmax.xlane.f32.xlu0 %v2998_v47 }
 0x3b8   : > { %v3005_v50 = vadd.f32 %v2255_v49, %v2907_v0  ;;  %v1489_v51 = vpop.f32.mrb[53].mxu1  ;;  %1562 = vmax.xlane.f32.xlu1 %v3001_v48 }
 0x3b9   : > { %v2256_v52 = vpop.f32.mrb[54].mxu1  ;;  %v3014_v55 = vadd.f32 %v2907_v0, %v1489_v51 }
 0x3ba   : > { %v3009_v53 = vadd.f32 %v2256_v52, %v2907_v0  ;;  %v1492_v54 = vpop.f32.mrb[55].mxu1 }
 0x3bb   : > { %1572 = vmax.xlane.f32.xlu0 %v3005_v50  ;;  %v3017_v56 = vadd.f32 %v2907_v0, %v1492_v54 }
 0x3bc   : > { %1574 = vmax.xlane.f32.xlu1 %v3009_v53 }
 0x3bf   : > { %v2259_v57 = vpop.f32.mrb[56].mxu1  ;;  %1568 = vmax.xlane.f32.xlu0 %v3014_v55 }
 0x3c0   : > { %v1505_v58 = vpop.f32.mrb[57].mxu1  ;;  %1570 = vmax.xlane.f32.xlu1 %v3017_v56  ;;  %v3029_v63 = vadd.f32 %v2259_v57, %v2907_v0 }
 0x3c1   : > { %v3022_v59 = vadd.f32 %v2907_v0, %v1505_v58  ;;  %v2260_v60 = vpop.f32.mrb[58].mxu1 }
 0x3c2   : > { %v1508_v61 = vpop.f32.mrb[59].mxu1  ;;  %v3033_v1 = vadd.f32 %v2260_v60, %v2907_v0 }
 0x3c3   : > { %v3025_v62 = vadd.f32 %v2907_v0, %v1508_v61  ;;  %1576 = vmax.xlane.f32.xlu0 %v3022_v59 }
 0x3c5   : > { %1578 = vmax.xlane.f32.xlu1 %v3025_v62 }
 0x3c7   : > { %1580 = vmax.xlane.f32.xlu0 %v3029_v63 }
 0x3c9   : > { %1582 = vmax.xlane.f32.xlu1 %v3033_v1 }
 0x417   : > { %v1525_v3 = vpop.xlane.xlu1 %1524 }
 0x418   : > { %v1586_v4 = vsub.f32 %v2910_v2, %v1525_v3  ;;  %v1521_v5 = vpop.xlane.xlu0 %1520 }
 0x419   : > { %v1584_v8 = vsub.f32 %v2913_v26, %v1521_v5 }
 0x41a   : > { %v1620_v10 = vmul.f32 1.442695, %v1586_v4 }
 0x41b   : > { %v1616_v11 = vmul.f32 1.442695, %v1584_v8  ;;  %v1527_v13 = vpop.xlane.xlu1 %1526 }
 0x41c   : > { %2360 = vpow2.f32 %v1620_v10  ;;  %v1587_v16 = vsub.f32 %v2918_v6, %v1527_v13  ;;  %v1523_v18 = vpop.xlane.xlu0 %1522 }
 0x41d   : > { %v1585_v0 = vsub.f32 %v2921_v7, %v1523_v18  ;;  %2362 = vpow2.f32 %v1616_v11 }
 0x41e   : > { %v1622_v19 = vmul.f32 1.442695, %v1587_v16 }
 0x41f   : > { %v1618_v33 = vmul.f32 1.442695, %v1585_v0 }
 0x420   : > { %2364 = vpow2.f32 %v1622_v19  ;;  %v1533_v27 = vpop.xlane.xlu0 %1532 }
 0x421   : > { %v1590_v28 = vsub.f32 %v2926_v9, %v1533_v27  ;;  %v1535_v2 = vpop.xlane.xlu1 %1534  ;;  %2366 = vpow2.f32 %v1618_v33 }
 0x422   : > { %v1591_v29 = vsub.f32 %v2929_v12, %v1535_v2 }
 0x423   : > { %v1628_v26 = vmul.f32 1.442695, %v1590_v28 }
 0x424   : > { %v1630_v31 = vmul.f32 1.442695, %v1591_v29  ;;  %v1529_v34 = vpop.xlane.xlu0 %1528 }
 0x425   : > { %2368 = vpow2.f32 %v1628_v26  ;;  %v1588_v6 = vsub.f32 %v2934_v14, %v1529_v34  ;;  %v1531_v36 = vpop.xlane.xlu1 %1530 }
 0x426   : > { %v3044_v37 = vpop.eup %2360  ;;  %v1589_v7 = vsub.f32 %v2937_v15, %v1531_v36  ;;  %2370 = vpow2.f32 %v1630_v31 }
 0x427   : > { %v1624_v39 = vmul.f32 1.442695, %v1588_v6  ;;  %1684 = vadd.xlane.f32.xlu0 %v3044_v37  ;;  %v3048_v43 = vpop.eup %2362 }
 0x428   : > { %v1626_v9 = vmul.f32 1.442695, %v1589_v7  ;;  %v1541_v42 = vpop.xlane.xlu0 %1540 }
 0x429   : > { %2372 = vpow2.f32 %v1624_v39  ;;  %v1594_v12 = vsub.f32 %v2941_v17, %v1541_v42  ;;  %v1543_v44 = vpop.xlane.xlu1 %1542 }
 0x42a   : > { %v3051_v46 = vpop.eup %2364  ;;  %v1595_v14 = vsub.f32 %v2945_v20, %v1543_v44  ;;  %2374 = vpow2.f32 %v1626_v9 }
 0x42b   : > { %v1636_v49 = vmul.f32 1.442695, %v1594_v12  ;;  %1686 = vadd.xlane.f32.xlu1 %v3051_v46  ;;  %1680 = vadd.xlane.f32.xlu0 %v3048_v43  ;;  %v3057_v57 = vpop.eup %2366 }
 0x42c   : > { %v1638_v15 = vmul.f32 1.442695, %v1595_v14  ;;  %v1537_v51 = vpop.xlane.xlu0 %1536 }
 0x42d   : > { %2376 = vpow2.f32 %v1636_v49  ;;  %v1592_v52 = vsub.f32 %v2950_v21, %v1537_v51  ;;  %v1539_v54 = vpop.xlane.xlu1 %1538 }
 0x42e   : > { %v1593_v17 = vsub.f32 %v2953_v22, %v1539_v54  ;;  %2378 = vpow2.f32 %v1638_v15 }
 0x42f   : > { %v3060_v58 = vpop.eup %2368  ;;  %v1632_v60 = vmul.f32 1.442695, %v1592_v52  ;;  %1682 = vadd.xlane.f32.xlu1 %v3057_v57 }
 0x430   : > { %v1634_v20 = vmul.f32 1.442695, %v1593_v17  ;;  %1692 = vadd.xlane.f32.xlu0 %v3060_v58  ;;  %v1549_v61 = vpop.xlane.xlu0 %1548  ;;  %v3065_v21 = vpop.eup %2370 }
 0x431   : > { %2380 = vpow2.f32 %v1632_v60  ;;  %v1598_v3 = vsub.f32 %v2957_v23, %v1549_v61  ;;  %v1551_v4 = vpop.xlane.xlu1 %1550 }
 0x432   : > { %v1599_v5 = vsub.f32 %v2961_v30, %v1551_v4  ;;  %2382 = vpow2.f32 %v1634_v20 }
 0x433   : > { %v3068_v8 = vpop.eup %2372  ;;  %v1644_v22 = vmul.f32 1.442695, %v1598_v3  ;;  %1694 = vadd.xlane.f32.xlu1 %v3065_v21 }
 0x434   : > { %v1646_v10 = vmul.f32 1.442695, %v1599_v5  ;;  %1688 = vadd.xlane.f32.xlu0 %v3068_v8  ;;  %v1545_v11 = vpop.xlane.xlu0 %1544  ;;  %v3073_v23 = vpop.eup %2374 }
 0x435   : > { %2384 = vpow2.f32 %v1644_v22  ;;  %v1596_v13 = vsub.f32 %v2966_v24, %v1545_v11  ;;  %v1547_v16 = vpop.xlane.xlu1 %1546 }
 0x436   : > { %v1597_v18 = vsub.f32 %v2969_v32, %v1547_v16  ;;  %2386 = vpow2.f32 %v1646_v10 }
 0x437   : > { %v3076_v0 = vpop.eup %2376  ;;  %v1640_v30 = vmul.f32 1.442695, %v1596_v13  ;;  %1690 = vadd.xlane.f32.xlu1 %v3073_v23 }
 0x438   : > { %v1642_v19 = vmul.f32 1.442695, %v1597_v18  ;;  %1700 = vadd.xlane.f32.xlu0 %v3076_v0  ;;  %v1557_v33 = vpop.xlane.xlu0 %1556  ;;  %v3081_v24 = vpop.eup %2378 }
 0x439   : > { %2388 = vpow2.f32 %v1640_v30  ;;  %v1602_v27 = vsub.f32 %v2973_v35, %v1557_v33  ;;  %v1559_v28 = vpop.xlane.xlu1 %1558 }
 0x43a   : > { %v1603_v2 = vsub.f32 %v2977_v38, %v1559_v28  ;;  %2390 = vpow2.f32 %v1642_v19 }
 0x43b   : > { %v3084_v29 = vpop.eup %2380  ;;  %v1652_v32 = vmul.f32 1.442695, %v1602_v27  ;;  %1702 = vadd.xlane.f32.xlu1 %v3081_v24 }
 0x43c   : > { %v1654_v26 = vmul.f32 1.442695, %v1603_v2  ;;  %1696 = vadd.xlane.f32.xlu0 %v3084_v29  ;;  %v1553_v31 = vpop.xlane.xlu0 %1552  ;;  %v3089_v35 = vpop.eup %2382 }
 0x43d   : > { %2392 = vpow2.f32 %v1652_v32  ;;  %v1600_v34 = vsub.f32 %v2982_v40, %v1553_v31  ;;  %v1555_v6 = vpop.xlane.xlu1 %1554 }
 0x43e   : > { %v1601_v36 = vsub.f32 %v2985_v41, %v1555_v6  ;;  %2394 = vpow2.f32 %v1654_v26 }
 0x43f   : > { %v3092_v7 = vpop.eup %2384  ;;  %v1648_v38 = vmul.f32 1.442695, %v1600_v34  ;;  %1698 = vadd.xlane.f32.xlu1 %v3089_v35 }
 0x440   : > { %v1650_v39 = vmul.f32 1.442695, %v1601_v36  ;;  %1708 = vadd.xlane.f32.xlu0 %v3092_v7  ;;  %v1565_v9 = vpop.xlane.xlu0 %1564  ;;  %v3097_v40 = vpop.eup %2386 }
 0x441   : > { %2396 = vpow2.f32 %v1648_v38  ;;  %v1606_v42 = vsub.f32 %v2989_v25, %v1565_v9  ;;  %v1567_v12 = vpop.xlane.xlu1 %1566 }
 0x442   : > { %v1607_v44 = vsub.f32 %v2993_v45, %v1567_v12  ;;  %2398 = vpow2.f32 %v1650_v39 }
 0x443   : > { %v3100_v14 = vpop.eup %2388  ;;  %v1660_v41 = vmul.f32 1.442695, %v1606_v42  ;;  %1710 = vadd.xlane.f32.xlu1 %v3097_v40 }
 0x444   : > { %v1662_v49 = vmul.f32 1.442695, %v1607_v44  ;;  %1704 = vadd.xlane.f32.xlu0 %v3100_v14  ;;  %v1561_v15 = vpop.xlane.xlu0 %1560  ;;  %v3105_v25 = vpop.eup %2390 }
 0x445   : > { %2400 = vpow2.f32 %v1660_v41  ;;  %v1604_v51 = vsub.f32 %v2998_v47, %v1561_v15  ;;  %v1563_v52 = vpop.xlane.xlu1 %1562 }
 0x446   : > { %v1605_v54 = vsub.f32 %v3001_v48, %v1563_v52  ;;  %2402 = vpow2.f32 %v1662_v49 }
 0x447   : > { %v3108_v17 = vpop.eup %2392  ;;  %v1656_v45 = vmul.f32 1.442695, %v1604_v51  ;;  %1706 = vadd.xlane.f32.xlu1 %v3105_v25 }
 0x448   : > { %v1658_v60 = vmul.f32 1.442695, %v1605_v54  ;;  %1716 = vadd.xlane.f32.xlu0 %v3108_v17  ;;  %v1573_v20 = vpop.xlane.xlu0 %1572  ;;  %v3113_v47 = vpop.eup %2394 }
 0x449   : > { %2404 = vpow2.f32 %v1656_v45  ;;  %v1610_v61 = vsub.f32 %v3005_v50, %v1573_v20  ;;  %v1575_v3 = vpop.xlane.xlu1 %1574 }
 0x44a   : > { %v1611_v4 = vsub.f32 %v3009_v53, %v1575_v3  ;;  %2406 = vpow2.f32 %v1658_v60 }
 0x44b   : > { %v3116_v5 = vpop.eup %2396  ;;  %v1668_v48 = vmul.f32 1.442695, %v1610_v61  ;;  %1718 = vadd.xlane.f32.xlu1 %v3113_v47 }
 0x44c   : > { %v1670_v22 = vmul.f32 1.442695, %v1611_v4  ;;  %1712 = vadd.xlane.f32.xlu0 %v3116_v5  ;;  %v1569_v10 = vpop.xlane.xlu0 %1568  ;;  %v3121_v50 = vpop.eup %2398 }
 0x44d   : > { %2408 = vpow2.f32 %v1668_v48  ;;  %v1608_v11 = vsub.f32 %v3014_v55, %v1569_v10  ;;  %v1571_v13 = vpop.xlane.xlu1 %1570 }
 0x44e   : > { %v1609_v16 = vsub.f32 %v3017_v56, %v1571_v13  ;;  %2410 = vpow2.f32 %v1670_v22 }
 0x44f   : > { %v3124_v18 = vpop.eup %2400  ;;  %v1664_v53 = vmul.f32 1.442695, %v1608_v11  ;;  %1714 = vadd.xlane.f32.xlu1 %v3121_v50 }
 0x450   : > { %v1666_v30 = vmul.f32 1.442695, %v1609_v16  ;;  %1724 = vadd.xlane.f32.xlu0 %v3124_v18  ;;  %v1577_v19 = vpop.xlane.xlu0 %1576  ;;  %v3129_v27 = vpop.eup %2402 }
 0x451   : > { %2412 = vpow2.f32 %v1664_v53  ;;  %v1612_v33 = vsub.f32 %v3022_v59, %v1577_v19 }
 0x452   : > { %v1579_v55 = vpop.xlane.xlu1 %1578  ;;  %2414 = vpow2.f32 %v1666_v30 }
 0x453   : > { %v3131_v28 = vpop.eup %2404  ;;  %v1672_v2 = vmul.f32 1.442695, %v1612_v33  ;;  %v1613_v56 = vsub.f32 %v3025_v62, %v1579_v55  ;;  %1726 = vadd.xlane.f32.xlu1 %v3129_v27 }
 0x454   : > { %1720 = vadd.xlane.f32.xlu0 %v3131_v28  ;;  %v1581_v32 = vpop.xlane.xlu0 %1580  ;;  %v3137_v34 = vpop.eup %2406 }
 0x455   : > { %2416 = vpow2.f32 %v1672_v2  ;;  %v1674_v26 = vmul.f32 1.442695, %v1613_v56  ;;  %v1614_v31 = vsub.f32 %v3029_v63, %v1581_v32 }
 0x456   : > { %v1583_v59 = vpop.xlane.xlu1 %1582 }
 0x457   : > { %v3139_v6 = vpop.eup %2408  ;;  %2418 = vpow2.f32 %v1674_v26  ;;  %v1676_v36 = vmul.f32 1.442695, %v1614_v31  ;;  %v1615_v38 = vsub.f32 %v3033_v1, %v1583_v59  ;;  %1722 = vadd.xlane.f32.xlu1 %v3137_v34 }
 0x458   : > { %1732 = vadd.xlane.f32.xlu0 %v3139_v6  ;;  %v3144_v39 = vpop.eup %2410 }
 0x459   : > { %2420 = vpow2.f32 %v1676_v36  ;;  %v1678_v62 = vmul.f32 1.442695, %v1615_v38 }
 0x45b   : > { %v3146_v9 = vpop.eup %2412  ;;  %2422 = vpow2.f32 %v1678_v62  ;;  %1734 = vadd.xlane.f32.xlu1 %v3144_v39 }
 0x45c   : > { %1728 = vadd.xlane.f32.xlu0 %v3146_v9  ;;  %v3150_v63 = vpop.eup %2414 }
 0x45f   : > { %v3152_v42 = vpop.eup %2416  ;;  %1730 = vadd.xlane.f32.xlu1 %v3150_v63 }
 0x460   : > { %1736 = vadd.xlane.f32.xlu0 %v3152_v42 }
 0x461   : > { %v3156_v1 = vpop.eup %2418 }
 0x463   : > { %v3158_v12 = vpop.eup %2420  ;;  %1738 = vadd.xlane.f32.xlu1 %v3156_v1 }
 0x464   : > { %1740 = vadd.xlane.f32.xlu0 %v3158_v12 }
 0x465   : > { %v3162_v44 = vpop.eup %2422 }
 0x467   : > { %1742 = vadd.xlane.f32.xlu1 %v3162_v44 }
 0x4b4   : > { %v1685_v41 = vpop.xlane.xlu0 %1684 }
 0x4b5   : > { %2424 = vrcp.f32 %v1685_v41 }
 0x4b8   : > { %v1687_v49 = vpop.xlane.xlu1 %1686  ;;  %v1681_v15 = vpop.xlane.xlu0 %1680 }
 0x4b9   : > { %2426 = vrcp.f32 %v1687_v49 }
 0x4ba   : > { %2428 = vrcp.f32 %v1681_v15 }
 0x4bc   : > { %v1683_v51 = vpop.xlane.xlu1 %1682 }
 0x4bd   : > { %2430 = vrcp.f32 %v1683_v51  ;;  %v1693_v52 = vpop.xlane.xlu0 %1692 }
 0x4be   : > { %2432 = vrcp.f32 %v1693_v52 }
 0x4bf   : > { %v2425_v54 = vpop.eup %2424 }
 0x4c0   : > { %v1778_v45 = vmul.f32 %v2425_v54, %v3044_v37  ;;  %v1695_v60 = vpop.xlane.xlu1 %1694 }
 0x4c1   : > { %2434 = vrcp.f32 %v1695_v60  ;;  %v1689_v20 = vpop.xlane.xlu0 %1688 }
 0x4c2   : > { %1810 = vst [vmem:[%s3169_s28 + $0x10] sm:$0xff] %v1778_v45  ;;  %2436 = vrcp.f32 %v1689_v20 }
 0x4c3   : > { %v2427_v61 = vpop.eup %2426 }
 0x4c4   : > { %v2429_v3 = vpop.eup %2428  ;;  %v1779_v4 = vmul.f32 %v2427_v61, %v3051_v46  ;;  %v1691_v48 = vpop.xlane.xlu1 %1690 }
 0x4c5   : > { %v1776_v22 = vmul.f32 %v2429_v3, %v3048_v43  ;;  %2438 = vrcp.f32 %v1691_v48  ;;  %v1701_v37 = vpop.xlane.xlu0 %1700 }
 0x4c6   : > { %1811 = vst [vmem:[%s3169_s28 + $0x18] sm:$0xff] %v1779_v4  ;;  %2440 = vrcp.f32 %v1701_v37 }
 0x4c7   : > { %v2431_v10 = vpop.eup %2430  ;;  %1808 = vst [vmem:[%s3169_s28] sm:$0xff] %v1776_v22 }
 0x4c8   : > { %v2433_v11 = vpop.eup %2432  ;;  %v1777_v13 = vmul.f32 %v2431_v10, %v3057_v57  ;;  %v1703_v16 = vpop.xlane.xlu1 %1702 }
 0x4c9   : > { %v1782_v53 = vmul.f32 %v2433_v11, %v3060_v58  ;;  %2442 = vrcp.f32 %v1703_v16  ;;  %v1697_v46 = vpop.xlane.xlu0 %1696 }
 0x4ca   : > { %1809 = vst [vmem:[%s3169_s28 + $0x8] sm:$0xff] %v1777_v13  ;;  %2444 = vrcp.f32 %v1697_v46 }
 0x4cb   : > { %v2435_v43 = vpop.eup %2434  ;;  %1814 = vst [vmem:[%s3169_s28 + $0x30] sm:$0xff] %v1782_v53 }
 0x4cc   : > { %v2437_v30 = vpop.eup %2436  ;;  %v1783_v19 = vmul.f32 %v2435_v43, %v3065_v21  ;;  %v1699_v33 = vpop.xlane.xlu1 %1698 }
 0x4cd   : > { %v1780_v55 = vmul.f32 %v2437_v30, %v3068_v8  ;;  %2446 = vrcp.f32 %v1699_v33  ;;  %v1709_v57 = vpop.xlane.xlu0 %1708 }
 0x4ce   : > { %1815 = vst [vmem:[%s3169_s28 + $0x38] sm:$0xff] %v1783_v19  ;;  %2448 = vrcp.f32 %v1709_v57 }
 0x4cf   : > { %v2439_v58 = vpop.eup %2438  ;;  %1812 = vst [vmem:[%s3169_s28 + $0x20] sm:$0xff] %v1780_v55 }
 0x4d0   : > { %v2441_v2 = vpop.eup %2440  ;;  %v1781_v56 = vmul.f32 %v2439_v58, %v3073_v23  ;;  %v1711_v32 = vpop.xlane.xlu1 %1710 }
 0x4d1   : > { %v1786_v26 = vmul.f32 %v2441_v2, %v3076_v0  ;;  %2450 = vrcp.f32 %v1711_v32  ;;  %v1705_v21 = vpop.xlane.xlu0 %1704 }
 0x4d2   : > { %1813 = vst [vmem:[%s3169_s28 + $0x28] sm:$0xff] %v1781_v56  ;;  %2452 = vrcp.f32 %v1705_v21 }
 0x4d3   : > { %v2443_v8 = vpop.eup %2442  ;;  %1818 = vst [vmem:[%s3169_s28 + $0x50] sm:$0xff] %v1786_v26 }
 0x4d4   : > { %v2445_v31 = vpop.eup %2444  ;;  %v1787_v59 = vmul.f32 %v2443_v8, %v3081_v24  ;;  %v1707_v36 = vpop.xlane.xlu1 %1706 }
 0x4d5   : > { %v1784_v38 = vmul.f32 %v2445_v31, %v3084_v29  ;;  %2454 = vrcp.f32 %v1707_v36  ;;  %v1717_v23 = vpop.xlane.xlu0 %1716 }
 0x4d6   : > { %1819 = vst [vmem:[%s3169_s28 + $0x58] sm:$0xff] %v1787_v59  ;;  %2456 = vrcp.f32 %v1717_v23 }
 0x4d7   : > { %v2447_v0 = vpop.eup %2446  ;;  %1816 = vst [vmem:[%s3169_s28 + $0x40] sm:$0xff] %v1784_v38 }
 0x4d8   : > { %v2449_v62 = vpop.eup %2448  ;;  %v1785_v41 = vmul.f32 %v2447_v0, %v3089_v35  ;;  %v1719_v49 = vpop.xlane.xlu1 %1718 }
 0x4d9   : > { %v1790_v15 = vmul.f32 %v2449_v62, %v3092_v7  ;;  %2458 = vrcp.f32 %v1719_v49  ;;  %v1713_v24 = vpop.xlane.xlu0 %1712 }
 0x4da   : > { %1817 = vst [vmem:[%s3169_s28 + $0x48] sm:$0xff] %v1785_v41  ;;  %2460 = vrcp.f32 %v1713_v24 }
 0x4db   : > { %v2451_v29 = vpop.eup %2450  ;;  %1822 = vst [vmem:[%s3169_s28 + $0x70] sm:$0xff] %v1790_v15 }
 0x4dc   : > { %v2453_v51 = vpop.eup %2452  ;;  %v1791_v52 = vmul.f32 %v2451_v29, %v3097_v40  ;;  %v1715_v54 = vpop.xlane.xlu1 %1714 }
 0x4dd   : > { %v1788_v45 = vmul.f32 %v2453_v51, %v3100_v14  ;;  %2462 = vrcp.f32 %v1715_v54  ;;  %v1725_v35 = vpop.xlane.xlu0 %1724 }
 0x4de   : > { %1823 = vst [vmem:[%s3169_s28 + $0x78] sm:$0xff] %v1791_v52  ;;  %2464 = vrcp.f32 %v1725_v35 }
 0x4df   : > { %v2455_v7 = vpop.eup %2454  ;;  %1820 = vst [vmem:[%s3169_s28 + $0x60] sm:$0xff] %v1788_v45 }
 0x4e0   : > { %v2457_v60 = vpop.eup %2456  ;;  %v1789_v20 = vmul.f32 %v2455_v7, %v3105_v25  ;;  %v1727_v61 = vpop.xlane.xlu1 %1726 }
 0x4e1   : > { %v1794_v3 = vmul.f32 %v2457_v60, %v3108_v17  ;;  %2466 = vrcp.f32 %v1727_v61  ;;  %v1721_v40 = vpop.xlane.xlu0 %1720 }
 0x4e2   : > { %1821 = vst [vmem:[%s3169_s28 + $0x68] sm:$0xff] %v1789_v20  ;;  %2468 = vrcp.f32 %v1721_v40 }
 0x4e3   : > { %v2459_v14 = vpop.eup %2458  ;;  %1826 = vst [vmem:[%s3169_s28 + $0x90] sm:$0xff] %v1794_v3 }
 0x4e4   : > { %v2461_v4 = vpop.eup %2460  ;;  %v1795_v48 = vmul.f32 %v2459_v14, %v3113_v47  ;;  %v1723_v22 = vpop.xlane.xlu1 %1722 }
 0x4e5   : > { %v1792_v37 = vmul.f32 %v2461_v4, %v3116_v5  ;;  %2470 = vrcp.f32 %v1723_v22  ;;  %v1733_v25 = vpop.xlane.xlu0 %1732 }
 0x4e6   : > { %1827 = vst [vmem:[%s3169_s28 + $0x98] sm:$0xff] %v1795_v48  ;;  %2472 = vrcp.f32 %v1733_v25 }
 0x4e7   : > { %v2463_v17 = vpop.eup %2462  ;;  %1824 = vst [vmem:[%s3169_s28 + $0x80] sm:$0xff] %v1792_v37 }
 0x4e8   : > { %v2465_v10 = vpop.eup %2464  ;;  %v1793_v11 = vmul.f32 %v2463_v17, %v3121_v50  ;;  %v1735_v13 = vpop.xlane.xlu1 %1734 }
 0x4e9   : > { %v1798_v16 = vmul.f32 %v2465_v10, %v3124_v18  ;;  %2474 = vrcp.f32 %v1735_v13  ;;  %v1729_v47 = vpop.xlane.xlu0 %1728 }
 0x4ea   : > { %1825 = vst [vmem:[%s3169_s28 + $0x88] sm:$0xff] %v1793_v11  ;;  %2476 = vrcp.f32 %v1729_v47 }
 0x4eb   : > { %v2467_v5 = vpop.eup %2466  ;;  %1830 = vst [vmem:[%s3169_s28 + $0xb0] sm:$0xff] %v1798_v16 }
 0x4ec   : > { %v2469_v53 = vpop.eup %2468  ;;  %v1799_v46 = vmul.f32 %v2467_v5, %v3129_v27  ;;  %v1731_v43 = vpop.xlane.xlu1 %1730 }
 0x4ed   : > { %v1796_v30 = vmul.f32 %v2469_v53, %v3131_v28  ;;  %2478 = vrcp.f32 %v1731_v43  ;;  %v1737_v50 = vpop.xlane.xlu0 %1736 }
 0x4ee   : > { %1831 = vst [vmem:[%s3169_s28 + $0xb8] sm:$0xff] %v1799_v46  ;;  %2480 = vrcp.f32 %v1737_v50 }
 0x4ef   : > { %v2471_v18 = vpop.eup %2470  ;;  %1828 = vst [vmem:[%s3169_s28 + $0xa0] sm:$0xff] %v1796_v30 }
 0x4f0   : > { %v2473_v19 = vpop.eup %2472  ;;  %v1797_v33 = vmul.f32 %v2471_v18, %v3137_v34  ;;  %v1739_v55 = vpop.xlane.xlu1 %1738 }
 0x4f1   : > { %v1802_v57 = vmul.f32 %v2473_v19, %v3139_v6  ;;  %2482 = vrcp.f32 %v1739_v55  ;;  %v1741_v27 = vpop.xlane.xlu0 %1740 }
 0x4f2   : > { %1829 = vst [vmem:[%s3169_s28 + $0xa8] sm:$0xff] %v1797_v33  ;;  %2484 = vrcp.f32 %v1741_v27 }
 0x4f3   : > { %v2475_v28 = vpop.eup %2474  ;;  %1834 = vst [vmem:[%s3169_s28 + $0xd0] sm:$0xff] %v1802_v57 }
 0x4f4   : > { %v2477_v58 = vpop.eup %2476  ;;  %v1803_v2 = vmul.f32 %v2475_v28, %v3144_v39  ;;  %v1743_v56 = vpop.xlane.xlu1 %1742 }
 0x4f5   : > { %v1800_v34 = vmul.f32 %v2477_v58, %v3146_v9  ;;  %2486 = vrcp.f32 %v1743_v56 }
 0x4f6   : > { %1835 = vst [vmem:[%s3169_s28 + $0xd8] sm:$0xff] %v1803_v2 }
 0x4f7   : > { %v2479_v6 = vpop.eup %2478  ;;  %1832 = vst [vmem:[%s3169_s28 + $0xc0] sm:$0xff] %v1800_v34 }
 0x4f8   : > { %v2481_v32 = vpop.eup %2480  ;;  %v1801_v26 = vmul.f32 %v2479_v6, %v3150_v63 }
 0x4f9   : > { %v1804_v21 = vmul.f32 %v2481_v32, %v3152_v42 }
 0x4fa   : > { %1833 = vst [vmem:[%s3169_s28 + $0xc8] sm:$0xff] %v1801_v26 }
 0x4fb   : > { %v2483_v8 = vpop.eup %2482  ;;  %1836 = vst [vmem:[%s3169_s28 + $0xe0] sm:$0xff] %v1804_v21 }
 0x4fc   : > { %v2485_v39 = vpop.eup %2484  ;;  %v1805_v9 = vmul.f32 %v2483_v8, %v3156_v1 }
 0x4fd   : > { %v1806_v31 = vmul.f32 %v2485_v39, %v3158_v12 }
 0x4fe   : > { %1837 = vst [vmem:[%s3169_s28 + $0xe8] sm:$0xff] %v1805_v9 }
 0x4ff   : > { %v2487_v59 = vpop.eup %2486  ;;  %1838 = vst [vmem:[%s3169_s28 + $0xf0] sm:$0xff] %v1806_v31 }
 0x500   : > { %v1807_v63 = vmul.f32 %v2487_v59, %v3162_v44 }
 0x502   : > { %1839 = vst [vmem:[%s3169_s28 + $0xf8] sm:$0xff] %v1807_v63 }
 0x503   : > { %2501 = shalt.err (!%p2498_p3)
}
 0x504   : > { %s2502_s26 = scalar_lea.hbm %s3237_s22, 4096  ;;  %s2506_s29 = scalar_lea.hbm %s3295_s9, 8192 }
 0x505   : > { %p2503_p4 = scmp.ne.s32.totalorder %s3237_s22, %s2502_s26  ;;  %p2507_p9 = scmp.lt.u32.totalorder %s3237_s22, %s3295_s9 }
 0x506   : > { %p2508_p10 = scmp.lt.u32.totalorder %s2506_s29, %s2502_s26  ;;  %p2510_p12 = scmp.lt.u32.totalorder %s2502_s26, %s3237_s22 }
 0x507   : > { %p2504_p7 = pnand %p2503_p4, %p2643_p5 }
 0x508   : > { %p2509_p11 = por %p2508_p10, %p2507_p9 }
 0x509   : > { %p2505_p8 = pneg %p2504_p7 }
 0x50a   : > { %p2511_p13 = por %p2510_p12, %p2509_p11 }
 0x50c   : > { %p2512_p0 = pnand %p2511_p13, %p2505_p8 }
 0x50e   : > { %2515 = shalt.err (!%p2512_p0)
}
 0x50f   : > { %s2553_s24 = smov 128   ;;  %s2554_s23 = smov 8  }
 0x510   : > { %2277 = dma.vmem_to_hbm [thread:$0]  (%p2643_p5), %s3239_s14, 4096, %s3237_s22, %s3245_s13, %s2553_s24, %s2553_s24, %s2554_s23  }
 0x511 PF: > { %p2283_p1 = scmp.ge.s32.totalorder %s2550_s12, 2  ;;  %s1869_s25 = sand.u32 1, %s2538_s30  }
 0x512   : > { %s1870_s21 = scalar_lea.sflag [#allocation3], %s1869_s25 }
 0x513   : > { %p2280_p2 = pnand %p2283_p1, %p2647_p6 }
 0x515   : > { %2533 = dma.done.wait (!%p2280_p2), %s1870_s21, 4096  }
 0x516   : > { %2535 = vsyncadd (!%p2280_p2), %s1870_s21, 4294963200  ;;  %p19_p3 = scmp.ge.s32.totalorder %s2630_s15, 4   ;;  %s3298_s30 = smov %s2542_s10 }
 0x517   : > { %s3299_s10 = smov %s2546_s11  ;;  %s3300_s11 = smov %s2641_s18 }
 0x518   : > { %s3301_s12 = smov %s2630_s15  ;;  %21 = sbr.rel (!%p19_p3) target bundleno = 3 (0x3), region = 91 }
 0x51f   :  { %1875 = vsyncpa [#allocation3], 1 }
 0x520   :  { %1877 = vsyncpa [#allocation3 + $0x1], 1 }

</bundles_post_ra>
